<compile_context>
chip_gen: v5e
topology: v5e:2x2
jax: 0.10.0
libtpu: 0.0.40
codegen_flags: <defaults>
</compile_context>

<pallas_src>
import functools

import jax
import jax.numpy as jnp
from jax import lax
from jax.experimental import pallas as pl
from jax.experimental.pallas import tpu as pltpu


def _round_up(x, m):
    return (x + m - 1) // m * m


# ----------------------------------------------------------------------------
# Pallas kernel: T-block-streamed fused bi-directional masked GRU + bridge.
# ----------------------------------------------------------------------------
def _protein_en_kernel(
    lens_ref,    # [Bp, 1]        int32  sequence lengths (padded rows = 0)
    gxf_ref,     # [TB, Bp, 3Hp]  f32    fwd input-gate projections, block i
    gxb_ref,     # [TB, Bp, 3Hp]  f32    bwd input-gate projections, block NT-1-i
    whhf_ref,    # [Hp, 3Hp]      f32    fwd W_hh^T (lane-padded, gate-major)
    whhb_ref,    # [Hp, 3Hp]      f32    bwd W_hh^T
    bhnf_ref,    # [1, Hp]        f32    fwd b_hh of the n gate (lane-padded)
    bhnb_ref,    # [1, Hp]        f32    bwd b_hh of the n gate
    wbr_ref,     # [2Hp, Hp]      f32    bridge W^T (row/lane padded)
    bbr_ref,     # [1, Hp]        f32    bridge bias
    outf_ref,    # OUT [TB, Bp, Hp] f32  fwd direction outputs, block i
    outb_ref,    # OUT [TB, Bp, Hp] f32  bwd direction outputs, block NT-1-i
    init_ref,    # OUT [Bp, Hp]   f32    tanh(bridge(encoder_final))
    hf_ref,      # VMEM [Bp, Hp]  f32    fwd hidden carry (persists over grid)
    hb_ref,      # VMEM [Bp, Hp]  f32    bwd hidden carry
):
    i = pl.program_id(0)
    nt = pl.num_programs(0)
    TB, Bp, G = gxf_ref.shape
    Hp = G // 3

    @pl.when(i == 0)
    def _():
        hf_ref[...] = jnp.zeros_like(hf_ref)
        hb_ref[...] = jnp.zeros_like(hb_ref)

    lens = lens_ref[...]                                    # [Bp, 1] int32
    # hoisted broadcasts (JAX does not CSE broadcast_in_dim inside the loop)
    bhn_f = jnp.broadcast_to(bhnf_ref[...], (Bp, Hp))
    bhn_b = jnp.broadcast_to(bhnb_ref[...], (Bp, Hp))

    base_f = i * TB                                         # global fwd time base
    base_b = (nt - 1 - i) * TB                              # global bwd block base

    def step(j, carry):
        h_f, h_b = carry                                    # each [Bp, Hp]
        jb = TB - 1 - j
        t_f = base_f + j
        t_b = base_b + jb

        gx_f = gxf_ref[j]                                   # [Bp, 3Hp] lane-aligned
        gx_b = gxb_ref[jb]

        # two independent MXU pushes (no h concat on the critical path)
        gh_f = jnp.dot(h_f, whhf_ref[...], preferred_element_type=jnp.float32)
        gh_b = jnp.dot(h_b, whhb_ref[...], preferred_element_type=jnp.float32)

        # PyTorch nn.GRU gate order: reset | update | new.  All slices are
        # 128-lane aligned because each gate slot is Hp wide.
        r_f = jax.nn.sigmoid(gx_f[:, 0:Hp] + gh_f[:, 0:Hp])
        r_b = jax.nn.sigmoid(gx_b[:, 0:Hp] + gh_b[:, 0:Hp])
        z_f = jax.nn.sigmoid(gx_f[:, Hp:2 * Hp] + gh_f[:, Hp:2 * Hp])
        z_b = jax.nn.sigmoid(gx_b[:, Hp:2 * Hp] + gh_b[:, Hp:2 * Hp])
        n_f = jnp.tanh(gx_f[:, 2 * Hp:3 * Hp]
                       + r_f * (gh_f[:, 2 * Hp:3 * Hp] + bhn_f))
        n_b = jnp.tanh(gx_b[:, 2 * Hp:3 * Hp]
                       + r_b * (gh_b[:, 2 * Hp:3 * Hp] + bhn_b))

        hn_f = (1.0 - z_f) * n_f + z_f * h_f
        hn_b = (1.0 - z_b) * n_b + z_b * h_b

        # pack_padded_sequence semantics rebuilt from src_lengths
        m_f = t_f < lens                                    # [Bp, 1] bool
        m_b = t_b < lens

        h_f = jnp.where(m_f, hn_f, h_f)                     # frozen past seq end
        h_b = jnp.where(m_b, hn_b, h_b)                     # stays 0 in padding

        outf_ref[j] = jnp.where(m_f, h_f, 0.0)              # lane-dense [Bp,Hp] store
        outb_ref[jb] = jnp.where(m_b, h_b, 0.0)
        return (h_f, h_b)

    # inner loop over one T-block only (the grid provides the outer T loop),
    # fully unrolled so the LLO scheduler sees the whole block.
    h_f_fin, h_b_fin = lax.fori_loop(
        0, TB, step, (hf_ref[...], hb_ref[...]), unroll=True)

    hf_ref[...] = h_f_fin
    hb_ref[...] = h_b_fin

    # bridge: tanh(Linear(2H -> H)) on concat(fwd_final, bwd_final), last block
    @pl.when(i == nt - 1)
    def _():
        final_cat = jnp.concatenate([h_f_fin, h_b_fin], axis=-1)   # [Bp, 2Hp]
        init_ref[...] = jnp.tanh(
            jnp.dot(final_cat, wbr_ref[...],
                    preferred_element_type=jnp.float32) + bbr_ref[...])


# ----------------------------------------------------------------------------
# Wrapper: parameter folding / padding / gx precompute, pallas_call, unpad.
# ----------------------------------------------------------------------------
def protein_en_forward(params, src, src_mask, src_lengths, *, t_block=8):
    """src: [B, T] int32; src_mask: [B, 1, T] bool; src_lengths: [B] int32."""
    del src_mask  # pack_padded_sequence semantics are driven by src_lengths
    B, T = src.shape
    V, E = params["embed"].shape
    H = params["whh_f"].shape[1]
    f32 = jnp.float32

    Hp = _round_up(H, 128)            # lane-align each gate slot
    Bp = _round_up(B, 8)              # sublane-align the batch
    TB = max(1, min(int(t_block), T))
    Tp = _round_up(T, TB)
    NT = Tp // TB
    G = 3 * Hp

    embed = params["embed"].astype(f32)

    def fold_direction(wih, bih, whh, bhh):
        # wih [3H,E], bih [3H], whh [3H,H], bhh [3H]; PyTorch gate order r|z|n.
        tbl = embed @ wih.T                                  # [V, 3H]
        tbl_pad = jnp.zeros((V, G), f32)
        bias_pad = jnp.zeros((G,), f32)
        whh_pad = jnp.zeros((Hp, G), f32)
        for g in range(3):
            tbl_pad = tbl_pad.at[:, g * Hp:g * Hp + H].set(
                tbl[:, g * H:(g + 1) * H])
            bg = bih[g * H:(g + 1) * H]
            if g < 2:                       # fold b_hh of r, z gates into gx
                bg = bg + bhh[g * H:(g + 1) * H]
            bias_pad = bias_pad.at[g * Hp:g * Hp + H].set(bg)
            whh_pad = whh_pad.at[:H, g * Hp:g * Hp + H].set(
                whh[g * H:(g + 1) * H, :].T)
        gx = tbl_pad[src] + bias_pad                         # [B, T, 3Hp]
        gx = jnp.transpose(gx, (1, 0, 2))                    # time-major
        gx = jnp.pad(gx, ((0, Tp - T), (0, Bp - B), (0, 0)))
        bhn_pad = jnp.zeros((1, Hp), f32).at[0, :H].set(bhh[2 * H:3 * H])
        return gx.astype(f32), whh_pad, bhn_pad

    gx_f, whh_f, bhn_f = fold_direction(params["wih_f"], params["bih_f"],
                                        params["whh_f"], params["bhh_f"])
    gx_b, whh_b, bhn_b = fold_direction(params["wih_b"], params["bih_b"],
                                        params["whh_b"], params["bhh_b"])

    wbr = params["w_bridge"].astype(f32)                     # [H, 2H]
    wbr_pad = jnp.zeros((2 * Hp, Hp), f32)
    wbr_pad = wbr_pad.at[:H, :H].set(wbr[:, :H].T)           # fwd half
    wbr_pad = wbr_pad.at[Hp:Hp + H, :H].set(wbr[:, H:].T)    # bwd half
    bbr_pad = jnp.zeros((1, Hp), f32).at[0, :H].set(
        params["b_bridge"].astype(f32))

    lens = jnp.zeros((Bp, 1), jnp.int32).at[:B, 0].set(
        src_lengths.astype(jnp.int32))

    # resident-VMEM estimate (double-buffered pipelined operands + weights)
    gx_blk = TB * Bp * G * 4
    out_blk = TB * Bp * Hp * 4
    weights = (2 * Hp * G + 2 * Hp + 2 * Hp * Hp + Hp + Bp) * 4
    est = 2 * (2 * gx_blk + 2 * out_blk + weights + Bp * Hp * 4) \
        + 2 * Bp * Hp * 4
    vmem_limit = int(min(max(4 * est, 16 * 2**20), 100 * 2**20))

    grid_spec = pltpu.PrefetchScalarGridSpec(
        num_scalar_prefetch=0,
        grid=(NT,),
        in_specs=[
            pl.BlockSpec((Bp, 1), lambda i: (0, 0)),                  # lens
            pl.BlockSpec((TB, Bp, G), lambda i: (i, 0, 0)),           # gx_f
            pl.BlockSpec((TB, Bp, G), lambda i: (NT - 1 - i, 0, 0)),  # gx_b
            pl.BlockSpec((Hp, G), lambda i: (0, 0)),                  # whh_f
            pl.BlockSpec((Hp, G), lambda i: (0, 0)),                  # whh_b
            pl.BlockSpec((1, Hp), lambda i: (0, 0)),                  # bhn_f
            pl.BlockSpec((1, Hp), lambda i: (0, 0)),                  # bhn_b
            pl.BlockSpec((2 * Hp, Hp), lambda i: (0, 0)),             # wbr
            pl.BlockSpec((1, Hp), lambda i: (0, 0)),                  # bbr
        ],
        out_specs=[
            pl.BlockSpec((TB, Bp, Hp), lambda i: (i, 0, 0)),          # out_f
            pl.BlockSpec((TB, Bp, Hp), lambda i: (NT - 1 - i, 0, 0)), # out_b
            pl.BlockSpec((Bp, Hp), lambda i: (0, 0)),                 # init
        ],
        scratch_shapes=[
            pltpu.VMEM((Bp, Hp), f32),   # fwd hidden carry
            pltpu.VMEM((Bp, Hp), f32),   # bwd hidden carry
        ],
    )

    out_shapes = (
        jax.ShapeDtypeStruct((Tp, Bp, Hp), f32),
        jax.ShapeDtypeStruct((Tp, Bp, Hp), f32),
        jax.ShapeDtypeStruct((Bp, Hp), f32),
    )

    out_f, out_b, init_pad = pl.pallas_call(
        _protein_en_kernel,
        out_shape=out_shapes,
        grid_spec=grid_spec,
        compiler_params=pltpu.CompilerParams(
            dimension_semantics=("arbitrary",),
            vmem_limit_bytes=vmem_limit),
    )(lens, gx_f, gx_b, whh_f, whh_b, bhn_f, bhn_b, wbr_pad, bbr_pad)

    # strip padding + one layout op back to the module's batch-first layout
    # TODO(synk): if the downstream consumer accepts time-major [T, B, 2H],
    # this transpose can be dropped.
    enc = jnp.concatenate([out_f[:T, :B, :H], out_b[:T, :B, :H]], axis=-1)
    encoder_hidden = jnp.transpose(enc, (1, 0, 2))           # [B, T, 2H]
    protein_init = init_pad[None, :B, :H]                    # [1, B, H]
    return protein_init, encoder_hidden


# ----------------------------------------------------------------------------
# Pure-JAX reference (PyTorch-equivalent semantics) for correctness check.
# ----------------------------------------------------------------------------
def protein_en_reference(params, src, src_lengths):
    B, T = src.shape
    H = params["whh_f"].shape[1]
    x = params["embed"][src]                                 # [B, T, E]
    lens = src_lengths.astype(jnp.int32)

    def cell(x_t, h, wih, whh, bih, bhh):
        gx = x_t @ wih.T + bih
        gh = h @ whh.T + bhh
        r = jax.nn.sigmoid(gx[:, :H] + gh[:, :H])
        z = jax.nn.sigmoid(gx[:, H:2 * H] + gh[:, H:2 * H])
        n = jnp.tanh(gx[:, 2 * H:] + r * gh[:, 2 * H:])
        return (1.0 - z) * n + z * h

    h_f = jnp.zeros((B, H), jnp.float32)
    outs_f = []
    for t in range(T):
        m = (t < lens).astype(jnp.float32)[:, None]
        hn = cell(x[:, t], h_f, params["wih_f"], params["whh_f"],
                  params["bih_f"], params["bhh_f"])
        h_f = m * hn + (1.0 - m) * h_f
        outs_f.append(m * h_f)

    h_b = jnp.zeros((B, H), jnp.float32)
    outs_b = [None] * T
    for t in range(T - 1, -1, -1):
        m = (t < lens).astype(jnp.float32)[:, None]
        hn = cell(x[:, t], h_b, params["wih_b"], params["whh_b"],
                  params["bih_b"], params["bhh_b"])
        h_b = m * hn + (1.0 - m) * h_b
        outs_b[t] = m * h_b

    enc = jnp.concatenate(
        [jnp.stack(outs_f, axis=1), jnp.stack(outs_b, axis=1)], axis=-1)
    final = jnp.concatenate([h_f, h_b], axis=-1)
    init = jnp.tanh(final @ params["w_bridge"].T + params["b_bridge"])[None]
    return init, enc


# ----------------------------------------------------------------------------
# Deterministic parameter construction (synthetic, not a checkpoint load).
# ----------------------------------------------------------------------------
def make_params(key, V, E, H):
    keys = jax.random.split(key, 12)
    s_ih = 1.0 / jnp.sqrt(jnp.float32(E))
    s_hh = 1.0 / jnp.sqrt(jnp.float32(H))
    return {
        "embed":    jax.random.normal(keys[0], (V, E), jnp.float32) * 0.1,
        "wih_f":    jax.random.normal(keys[1], (3 * H, E), jnp.float32) * s_ih,
        "whh_f":    jax.random.normal(keys[2], (3 * H, H), jnp.float32) * s_hh,
        "bih_f":    jax.random.normal(keys[3], (3 * H,), jnp.float32) * 0.01,
        "bhh_f":    jax.random.normal(keys[4], (3 * H,), jnp.float32) * 0.01,
        "wih_b":    jax.random.normal(keys[5], (3 * H, E), jnp.float32) * s_ih,
        "whh_b":    jax.random.normal(keys[6], (3 * H, H), jnp.float32) * s_hh,
        "bih_b":    jax.random.normal(keys[7], (3 * H,), jnp.float32) * 0.01,
        "bhh_b":    jax.random.normal(keys[8], (3 * H,), jnp.float32) * 0.01,
        "w_bridge": jax.random.normal(keys[9], (H, 2 * H), jnp.float32) * s_hh,
        "b_bridge": jax.random.normal(keys[10], (H,), jnp.float32) * 0.01,
    }


if __name__ == "__main__":
    B, T, V, E, H = 2, 8, 25, 16, 32

    key = jax.random.PRNGKey(0)
    k_par, k_src = jax.random.split(key)
    params = make_params(k_par, V, E, H)

    src_lengths = jnp.array([T, 5], dtype=jnp.int32)
    tokens = jax.random.randint(k_src, (B, T), 1, V, dtype=jnp.int32)
    pos = jnp.arange(T, dtype=jnp.int32)[None, :]
    src = jnp.where(pos < src_lengths[:, None], tokens, 0)   # 0 = pad id
    src_mask = (src != 0)[:, None, :]                        # [B, 1, T]

    # t_block=4 -> a 2-step T grid, exercising the streamed/carried recurrence
    fwd = jax.jit(functools.partial(protein_en_forward, params, t_block=4))
    protein_init, encoder_hidden = fwd(src, src_mask, src_lengths)
    jax.block_until_ready((protein_init, encoder_hidden))

    assert protein_init.shape == (1, B, H)
    assert encoder_hidden.shape == (B, T, 2 * H)

    # correctness vs. pure-JAX reference of the PyTorch forward
    ref_init, ref_enc = protein_en_reference(params, src, src_lengths)
    assert bool(jnp.allclose(protein_init, ref_init, atol=1e-4, rtol=1e-4))
    assert bool(jnp.allclose(encoder_hidden, ref_enc, atol=1e-4, rtol=1e-4))

    print("KERNEL_OK")
</pallas_src>

<mosaic_0001>
module attributes {stable_mosaic.version = 11 : i64} {
  func.func @_protein_en_kernel(%arg0: i32, %arg1: memref<8x1xi32, #tpu.memory_space<vmem>>, %arg2: memref<4x8x384xf32, #tpu.memory_space<vmem>>, %arg3: memref<4x8x384xf32, #tpu.memory_space<vmem>>, %arg4: memref<128x384xf32, #tpu.memory_space<vmem>>, %arg5: memref<128x384xf32, #tpu.memory_space<vmem>>, %arg6: memref<1x128xf32, #tpu.memory_space<vmem>>, %arg7: memref<1x128xf32, #tpu.memory_space<vmem>>, %arg8: memref<256x128xf32, #tpu.memory_space<vmem>>, %arg9: memref<1x128xf32, #tpu.memory_space<vmem>>, %arg10: memref<4x8x128xf32, #tpu.memory_space<vmem>>, %arg11: memref<4x8x128xf32, #tpu.memory_space<vmem>>, %arg12: memref<8x128xf32, #tpu.memory_space<vmem>>, %arg13: memref<8x128xf32, #tpu.memory_space<vmem>>, %arg14: memref<8x128xf32, #tpu.memory_space<vmem>>) attributes {dimension_semantics = [#tpu.dimension_semantics<arbitrary>], iteration_bounds = array<i64: 2>, scalar_prefetch = 0 : i64, scratch_operands = 2 : i64, tpu.core_type = #tpu.core_type<tc>, window_params = [{pipeline_mode = #tpu.pipeline_mode<synchronous>, transform_indices = @transform_0, window_bounds = array<i64: 8, 1>}, {transform_indices = @transform_1, window_bounds = array<i64: 4, 8, 384>}, {transform_indices = @transform_2, window_bounds = array<i64: 4, 8, 384>}, {pipeline_mode = #tpu.pipeline_mode<synchronous>, transform_indices = @transform_3, window_bounds = array<i64: 128, 384>}, {pipeline_mode = #tpu.pipeline_mode<synchronous>, transform_indices = @transform_4, window_bounds = array<i64: 128, 384>}, {pipeline_mode = #tpu.pipeline_mode<synchronous>, transform_indices = @transform_5, window_bounds = array<i64: 1, 128>}, {pipeline_mode = #tpu.pipeline_mode<synchronous>, transform_indices = @transform_6, window_bounds = array<i64: 1, 128>}, {pipeline_mode = #tpu.pipeline_mode<synchronous>, transform_indices = @transform_7, window_bounds = array<i64: 256, 128>}, {pipeline_mode = #tpu.pipeline_mode<synchronous>, transform_indices = @transform_8, window_bounds = array<i64: 1, 128>}, {transform_indices = @transform_9, window_bounds = array<i64: 4, 8, 128>}, {transform_indices = @transform_10, window_bounds = array<i64: 4, 8, 128>}, {pipeline_mode = #tpu.pipeline_mode<synchronous>, transform_indices = @transform_11, window_bounds = array<i64: 8, 128>}]} {
    %c0_i32 = arith.constant 0 : i32
    %0 = arith.cmpi eq, %arg0, %c0_i32 : i32
    %1 = arith.extui %0 : i1 to i32
    %c0_i32_0 = arith.constant 0 : i32
    %2 = arith.cmpi ne, %1, %c0_i32_0 : i32
    scf.if %2 {
      %cst_111 = arith.constant 0.000000e+00 : f32
      %392 = vector.broadcast %cst_111 : f32 to vector<8x128xf32>
      %c0_112 = arith.constant 0 : index
      %c0_113 = arith.constant 0 : index
      %393 = vector.load %arg13[%c0_112, %c0_113] : memref<8x128xf32, #tpu.memory_space<vmem>>, vector<8x128xf32>
      tpu.vector_store %arg13[%c0_112, %c0_113], %392 {strides = array<i32>} : memref<8x128xf32, #tpu.memory_space<vmem>>, vector<8x128xf32>,
      %cst_114 = arith.constant 0.000000e+00 : f32
      %394 = vector.broadcast %cst_114 : f32 to vector<8x128xf32>
      %c0_115 = arith.constant 0 : index
      %c0_116 = arith.constant 0 : index
      %395 = vector.load %arg14[%c0_115, %c0_116] : memref<8x128xf32, #tpu.memory_space<vmem>>, vector<8x128xf32>
      tpu.vector_store %arg14[%c0_115, %c0_116], %394 {strides = array<i32>} : memref<8x128xf32, #tpu.memory_space<vmem>>, vector<8x128xf32>,
    } else {
    }
    %c0 = arith.constant 0 : index
    %c0_1 = arith.constant 0 : index
    %3 = vector.load %arg1[%c0, %c0_1] : memref<8x1xi32, #tpu.memory_space<vmem>>, vector<8x1xi32>
    %c0_2 = arith.constant 0 : index
    %c0_3 = arith.constant 0 : index
    %4 = vector.load %arg6[%c0_2, %c0_3] : memref<1x128xf32, #tpu.memory_space<vmem>>, vector<1x128xf32>
    %5 = vector.shape_cast %4 : vector<1x128xf32> to vector<1x128xf32>
    %6 = vector.broadcast %5 : vector<1x128xf32> to vector<8x128xf32>
    %c0_4 = arith.constant 0 : index
    %c0_5 = arith.constant 0 : index
    %7 = vector.load %arg7[%c0_4, %c0_5] : memref<1x128xf32, #tpu.memory_space<vmem>>, vector<1x128xf32>
    %8 = vector.shape_cast %7 : vector<1x128xf32> to vector<1x128xf32>
    %9 = vector.broadcast %8 : vector<1x128xf32> to vector<8x128xf32>
    %c4_i32 = arith.constant 4 : i32
    %10 = arith.muli %arg0, %c4_i32 : i32
    %c1_i32 = arith.constant 1 : i32
    %11 = arith.subi %c1_i32, %arg0 : i32
    %c4_i32_6 = arith.constant 4 : i32
    %12 = arith.muli %11, %c4_i32_6 : i32
    %c0_7 = arith.constant 0 : index
    %c0_8 = arith.constant 0 : index
    %13 = vector.load %arg13[%c0_7, %c0_8] : memref<8x128xf32, #tpu.memory_space<vmem>>, vector<8x128xf32>
    %c0_9 = arith.constant 0 : index
    %c0_10 = arith.constant 0 : index
    %14 = vector.load %arg14[%c0_9, %c0_10] : memref<8x128xf32, #tpu.memory_space<vmem>>, vector<8x128xf32>
    %c0_i32_11 = arith.constant 0 : i32
    %c3_i32 = arith.constant 3 : i32
    %15 = arith.subi %c3_i32, %c0_i32_11 : i32
    %16 = arith.addi %10, %c0_i32_11 : i32
    %17 = arith.addi %12, %15 : i32
    %18 = arith.index_cast %c0_i32_11 : i32 to index
    %c0_12 = arith.constant 0 : index
    %c0_13 = arith.constant 0 : index
    %19 = vector.load %arg2[%18, %c0_12, %c0_13] : memref<4x8x384xf32, #tpu.memory_space<vmem>>, vector<1x8x384xf32>
    %20 = vector.shape_cast %19 : vector<1x8x384xf32> to vector<8x384xf32>
    %21 = arith.index_cast %15 : i32 to index
    %c0_14 = arith.constant 0 : index
    %c0_15 = arith.constant 0 : index
    %22 = vector.load %arg3[%21, %c0_14, %c0_15] : memref<4x8x384xf32, #tpu.memory_space<vmem>>, vector<1x8x384xf32>
    %23 = vector.shape_cast %22 : vector<1x8x384xf32> to vector<8x384xf32>
    %c0_16 = arith.constant 0 : index
    %c0_17 = arith.constant 0 : index
    %24 = vector.load %arg4[%c0_16, %c0_17] : memref<128x384xf32, #tpu.memory_space<vmem>>, vector<128x384xf32>
    %cst = arith.constant dense<0.000000e+00> : vector<8x384xf32>
    %25 = tpu.matmul %13, %24, %cst {dimension_numbers = #tpu.dot_dimension_numbers<[1], [0], [0], [1], [0, 0, 1, 1], [], []>} : vector<8x128xf32>, vector<128x384xf32>, vector<8x384xf32> -> vector<8x384xf32>
    %c0_18 = arith.constant 0 : index
    %c0_19 = arith.constant 0 : index
    %26 = vector.load %arg5[%c0_18, %c0_19] : memref<128x384xf32, #tpu.memory_space<vmem>>, vector<128x384xf32>
    %cst_20 = arith.constant dense<0.000000e+00> : vector<8x384xf32>
    %27 = tpu.matmul %14, %26, %cst_20 {dimension_numbers = #tpu.dot_dimension_numbers<[1], [0], [0], [1], [0, 0, 1, 1], [], []>} : vector<8x128xf32>, vector<128x384xf32>, vector<8x384xf32> -> vector<8x384xf32>
    %28 = vector.extract_strided_slice %20 {offsets = [0, 0], sizes = [8, 128], strides = [1, 1]} : vector<8x384xf32> to vector<8x128xf32>
    %29 = vector.extract_strided_slice %25 {offsets = [0, 0], sizes = [8, 128], strides = [1, 1]} : vector<8x384xf32> to vector<8x128xf32>
    %30 = arith.addf %28, %29 : vector<8x128xf32>
    %31 = arith.negf %30 : vector<8x128xf32>
    %32 = math.exp %31 : vector<8x128xf32>
    %cst_21 = arith.constant 1.000000e+00 : f32
    %33 = vector.broadcast %cst_21 : f32 to vector<8x128xf32>
    %34 = arith.addf %33, %32 : vector<8x128xf32>
    %35 = arith.divf %33, %34 : vector<8x128xf32>
    %36 = vector.extract_strided_slice %23 {offsets = [0, 0], sizes = [8, 128], strides = [1, 1]} : vector<8x384xf32> to vector<8x128xf32>
    %37 = vector.extract_strided_slice %27 {offsets = [0, 0], sizes = [8, 128], strides = [1, 1]} : vector<8x384xf32> to vector<8x128xf32>
    %38 = arith.addf %36, %37 : vector<8x128xf32>
    %39 = arith.negf %38 : vector<8x128xf32>
    %40 = math.exp %39 : vector<8x128xf32>
    %cst_22 = arith.constant 1.000000e+00 : f32
    %41 = vector.broadcast %cst_22 : f32 to vector<8x128xf32>
    %42 = arith.addf %41, %40 : vector<8x128xf32>
    %43 = arith.divf %41, %42 : vector<8x128xf32>
    %44 = vector.extract_strided_slice %20 {offsets = [0, 128], sizes = [8, 128], strides = [1, 1]} : vector<8x384xf32> to vector<8x128xf32>
    %45 = vector.extract_strided_slice %25 {offsets = [0, 128], sizes = [8, 128], strides = [1, 1]} : vector<8x384xf32> to vector<8x128xf32>
    %46 = arith.addf %44, %45 : vector<8x128xf32>
    %47 = arith.negf %46 : vector<8x128xf32>
    %48 = math.exp %47 : vector<8x128xf32>
    %cst_23 = arith.constant 1.000000e+00 : f32
    %49 = vector.broadcast %cst_23 : f32 to vector<8x128xf32>
    %50 = arith.addf %49, %48 : vector<8x128xf32>
    %51 = arith.divf %49, %50 : vector<8x128xf32>
    %52 = vector.extract_strided_slice %23 {offsets = [0, 128], sizes = [8, 128], strides = [1, 1]} : vector<8x384xf32> to vector<8x128xf32>
    %53 = vector.extract_strided_slice %27 {offsets = [0, 128], sizes = [8, 128], strides = [1, 1]} : vector<8x384xf32> to vector<8x128xf32>
    %54 = arith.addf %52, %53 : vector<8x128xf32>
    %55 = arith.negf %54 : vector<8x128xf32>
    %56 = math.exp %55 : vector<8x128xf32>
    %cst_24 = arith.constant 1.000000e+00 : f32
    %57 = vector.broadcast %cst_24 : f32 to vector<8x128xf32>
    %58 = arith.addf %57, %56 : vector<8x128xf32>
    %59 = arith.divf %57, %58 : vector<8x128xf32>
    %60 = vector.extract_strided_slice %20 {offsets = [0, 256], sizes = [8, 128], strides = [1, 1]} : vector<8x384xf32> to vector<8x128xf32>
    %61 = vector.extract_strided_slice %25 {offsets = [0, 256], sizes = [8, 128], strides = [1, 1]} : vector<8x384xf32> to vector<8x128xf32>
    %62 = arith.addf %61, %6 : vector<8x128xf32>
    %63 = arith.mulf %35, %62 : vector<8x128xf32>
    %64 = arith.addf %60, %63 : vector<8x128xf32>
    %65 = math.tanh %64 : vector<8x128xf32>
    %66 = vector.extract_strided_slice %23 {offsets = [0, 256], sizes = [8, 128], strides = [1, 1]} : vector<8x384xf32> to vector<8x128xf32>
    %67 = vector.extract_strided_slice %27 {offsets = [0, 256], sizes = [8, 128], strides = [1, 1]} : vector<8x384xf32> to vector<8x128xf32>
    %68 = arith.addf %67, %9 : vector<8x128xf32>
    %69 = arith.mulf %43, %68 : vector<8x128xf32>
    %70 = arith.addf %66, %69 : vector<8x128xf32>
    %71 = math.tanh %70 : vector<8x128xf32>
    %cst_25 = arith.constant 1.000000e+00 : f32
    %72 = vector.broadcast %cst_25 : f32 to vector<8x128xf32>
    %73 = arith.subf %72, %51 : vector<8x128xf32>
    %74 = arith.mulf %73, %65 : vector<8x128xf32>
    %75 = arith.mulf %51, %13 : vector<8x128xf32>
    %76 = arith.addf %74, %75 : vector<8x128xf32>
    %cst_26 = arith.constant 1.000000e+00 : f32
    %77 = vector.broadcast %cst_26 : f32 to vector<8x128xf32>
    %78 = arith.subf %77, %59 : vector<8x128xf32>
    %79 = arith.mulf %78, %71 : vector<8x128xf32>
    %80 = arith.mulf %59, %14 : vector<8x128xf32>
    %81 = arith.addf %79, %80 : vector<8x128xf32>
    %82 = vector.broadcast %16 : i32 to vector<8x1xi32>
    %83 = arith.cmpi slt, %82, %3 : vector<8x1xi32>
    %84 = vector.broadcast %17 : i32 to vector<8x1xi32>
    %85 = arith.cmpi slt, %84, %3 : vector<8x1xi32>
    %86 = vector.shape_cast %83 : vector<8x1xi1> to vector<8x1xi1>
    %87 = vector.broadcast %86 : vector<8x1xi1> to vector<8x128xi1>
    %88 = arith.select %87, %76, %13 : vector<8x128xi1>, vector<8x128xf32>
    %89 = vector.shape_cast %85 : vector<8x1xi1> to vector<8x1xi1>
    %90 = vector.broadcast %89 : vector<8x1xi1> to vector<8x128xi1>
    %91 = arith.select %90, %81, %14 : vector<8x128xi1>, vector<8x128xf32>
    %cst_27 = arith.constant 0.000000e+00 : f32
    %92 = vector.shape_cast %83 : vector<8x1xi1> to vector<8x1xi1>
    %93 = vector.broadcast %92 : vector<8x1xi1> to vector<8x128xi1>
    %94 = vector.broadcast %cst_27 : f32 to vector<8x128xf32>
    %95 = arith.select %93, %88, %94 : vector<8x128xi1>, vector<8x128xf32>
    %96 = arith.index_cast %c0_i32_11 : i32 to index
    %c0_28 = arith.constant 0 : index
    %c0_29 = arith.constant 0 : index
    %97 = vector.load %arg10[%96, %c0_28, %c0_29] : memref<4x8x128xf32, #tpu.memory_space<vmem>>, vector<1x8x128xf32>
    %98 = vector.shape_cast %97 : vector<1x8x128xf32> to vector<8x128xf32>
    %99 = vector.shape_cast %95 : vector<8x128xf32> to vector<1x8x128xf32>
    tpu.vector_store %arg10[%96, %c0_28, %c0_29], %99 {strides = array<i32>} : memref<4x8x128xf32, #tpu.memory_space<vmem>>, vector<1x8x128xf32>,
    %cst_30 = arith.constant 0.000000e+00 : f32
    %100 = vector.shape_cast %85 : vector<8x1xi1> to vector<8x1xi1>
    %101 = vector.broadcast %100 : vector<8x1xi1> to vector<8x128xi1>
    %102 = vector.broadcast %cst_30 : f32 to vector<8x128xf32>
    %103 = arith.select %101, %91, %102 : vector<8x128xi1>, vector<8x128xf32>
    %104 = arith.index_cast %15 : i32 to index
    %c0_31 = arith.constant 0 : index
    %c0_32 = arith.constant 0 : index
    %105 = vector.load %arg11[%104, %c0_31, %c0_32] : memref<4x8x128xf32, #tpu.memory_space<vmem>>, vector<1x8x128xf32>
    %106 = vector.shape_cast %105 : vector<1x8x128xf32> to vector<8x128xf32>
    %107 = vector.shape_cast %103 : vector<8x128xf32> to vector<1x8x128xf32>
    tpu.vector_store %arg11[%104, %c0_31, %c0_32], %107 {strides = array<i32>} : memref<4x8x128xf32, #tpu.memory_space<vmem>>, vector<1x8x128xf32>,
    %c1_i32_33 = arith.constant 1 : i32
    %c3_i32_34 = arith.constant 3 : i32
    %108 = arith.subi %c3_i32_34, %c1_i32_33 : i32
    %109 = arith.addi %10, %c1_i32_33 : i32
    %110 = arith.addi %12, %108 : i32
    %111 = arith.index_cast %c1_i32_33 : i32 to index
    %c0_35 = arith.constant 0 : index
    %c0_36 = arith.constant 0 : index
    %112 = vector.load %arg2[%111, %c0_35, %c0_36] : memref<4x8x384xf32, #tpu.memory_space<vmem>>, vector<1x8x384xf32>
    %113 = vector.shape_cast %112 : vector<1x8x384xf32> to vector<8x384xf32>
    %114 = arith.index_cast %108 : i32 to index
    %c0_37 = arith.constant 0 : index
    %c0_38 = arith.constant 0 : index
    %115 = vector.load %arg3[%114, %c0_37, %c0_38] : memref<4x8x384xf32, #tpu.memory_space<vmem>>, vector<1x8x384xf32>
    %116 = vector.shape_cast %115 : vector<1x8x384xf32> to vector<8x384xf32>
    %c0_39 = arith.constant 0 : index
    %c0_40 = arith.constant 0 : index
    %117 = vector.load %arg4[%c0_39, %c0_40] : memref<128x384xf32, #tpu.memory_space<vmem>>, vector<128x384xf32>
    %cst_41 = arith.constant dense<0.000000e+00> : vector<8x384xf32>
    %118 = tpu.matmul %88, %117, %cst_41 {dimension_numbers = #tpu.dot_dimension_numbers<[1], [0], [0], [1], [0, 0, 1, 1], [], []>} : vector<8x128xf32>, vector<128x384xf32>, vector<8x384xf32> -> vector<8x384xf32>
    %c0_42 = arith.constant 0 : index
    %c0_43 = arith.constant 0 : index
    %119 = vector.load %arg5[%c0_42, %c0_43] : memref<128x384xf32, #tpu.memory_space<vmem>>, vector<128x384xf32>
    %cst_44 = arith.constant dense<0.000000e+00> : vector<8x384xf32>
    %120 = tpu.matmul %91, %119, %cst_44 {dimension_numbers = #tpu.dot_dimension_numbers<[1], [0], [0], [1], [0, 0, 1, 1], [], []>} : vector<8x128xf32>, vector<128x384xf32>, vector<8x384xf32> -> vector<8x384xf32>
    %121 = vector.extract_strided_slice %113 {offsets = [0, 0], sizes = [8, 128], strides = [1, 1]} : vector<8x384xf32> to vector<8x128xf32>
    %122 = vector.extract_strided_slice %118 {offsets = [0, 0], sizes = [8, 128], strides = [1, 1]} : vector<8x384xf32> to vector<8x128xf32>
    %123 = arith.addf %121, %122 : vector<8x128xf32>
    %124 = arith.negf %123 : vector<8x128xf32>
    %125 = math.exp %124 : vector<8x128xf32>
    %cst_45 = arith.constant 1.000000e+00 : f32
    %126 = vector.broadcast %cst_45 : f32 to vector<8x128xf32>
    %127 = arith.addf %126, %125 : vector<8x128xf32>
    %128 = arith.divf %126, %127 : vector<8x128xf32>
    %129 = vector.extract_strided_slice %116 {offsets = [0, 0], sizes = [8, 128], strides = [1, 1]} : vector<8x384xf32> to vector<8x128xf32>
    %130 = vector.extract_strided_slice %120 {offsets = [0, 0], sizes = [8, 128], strides = [1, 1]} : vector<8x384xf32> to vector<8x128xf32>
    %131 = arith.addf %129, %130 : vector<8x128xf32>
    %132 = arith.negf %131 : vector<8x128xf32>
    %133 = math.exp %132 : vector<8x128xf32>
    %cst_46 = arith.constant 1.000000e+00 : f32
    %134 = vector.broadcast %cst_46 : f32 to vector<8x128xf32>
    %135 = arith.addf %134, %133 : vector<8x128xf32>
    %136 = arith.divf %134, %135 : vector<8x128xf32>
    %137 = vector.extract_strided_slice %113 {offsets = [0, 128], sizes = [8, 128], strides = [1, 1]} : vector<8x384xf32> to vector<8x128xf32>
    %138 = vector.extract_strided_slice %118 {offsets = [0, 128], sizes = [8, 128], strides = [1, 1]} : vector<8x384xf32> to vector<8x128xf32>
    %139 = arith.addf %137, %138 : vector<8x128xf32>
    %140 = arith.negf %139 : vector<8x128xf32>
    %141 = math.exp %140 : vector<8x128xf32>
    %cst_47 = arith.constant 1.000000e+00 : f32
    %142 = vector.broadcast %cst_47 : f32 to vector<8x128xf32>
    %143 = arith.addf %142, %141 : vector<8x128xf32>
    %144 = arith.divf %142, %143 : vector<8x128xf32>
    %145 = vector.extract_strided_slice %116 {offsets = [0, 128], sizes = [8, 128], strides = [1, 1]} : vector<8x384xf32> to vector<8x128xf32>
    %146 = vector.extract_strided_slice %120 {offsets = [0, 128], sizes = [8, 128], strides = [1, 1]} : vector<8x384xf32> to vector<8x128xf32>
    %147 = arith.addf %145, %146 : vector<8x128xf32>
    %148 = arith.negf %147 : vector<8x128xf32>
    %149 = math.exp %148 : vector<8x128xf32>
    %cst_48 = arith.constant 1.000000e+00 : f32
    %150 = vector.broadcast %cst_48 : f32 to vector<8x128xf32>
    %151 = arith.addf %150, %149 : vector<8x128xf32>
    %152 = arith.divf %150, %151 : vector<8x128xf32>
    %153 = vector.extract_strided_slice %113 {offsets = [0, 256], sizes = [8, 128], strides = [1, 1]} : vector<8x384xf32> to vector<8x128xf32>
    %154 = vector.extract_strided_slice %118 {offsets = [0, 256], sizes = [8, 128], strides = [1, 1]} : vector<8x384xf32> to vector<8x128xf32>
    %155 = arith.addf %154, %6 : vector<8x128xf32>
    %156 = arith.mulf %128, %155 : vector<8x128xf32>
    %157 = arith.addf %153, %156 : vector<8x128xf32>
    %158 = math.tanh %157 : vector<8x128xf32>
    %159 = vector.extract_strided_slice %116 {offsets = [0, 256], sizes = [8, 128], strides = [1, 1]} : vector<8x384xf32> to vector<8x128xf32>
    %160 = vector.extract_strided_slice %120 {offsets = [0, 256], sizes = [8, 128], strides = [1, 1]} : vector<8x384xf32> to vector<8x128xf32>
    %161 = arith.addf %160, %9 : vector<8x128xf32>
    %162 = arith.mulf %136, %161 : vector<8x128xf32>
    %163 = arith.addf %159, %162 : vector<8x128xf32>
    %164 = math.tanh %163 : vector<8x128xf32>
    %cst_49 = arith.constant 1.000000e+00 : f32
    %165 = vector.broadcast %cst_49 : f32 to vector<8x128xf32>
    %166 = arith.subf %165, %144 : vector<8x128xf32>
    %167 = arith.mulf %166, %158 : vector<8x128xf32>
    %168 = arith.mulf %144, %88 : vector<8x128xf32>
    %169 = arith.addf %167, %168 : vector<8x128xf32>
    %cst_50 = arith.constant 1.000000e+00 : f32
    %170 = vector.broadcast %cst_50 : f32 to vector<8x128xf32>
    %171 = arith.subf %170, %152 : vector<8x128xf32>
    %172 = arith.mulf %171, %164 : vector<8x128xf32>
    %173 = arith.mulf %152, %91 : vector<8x128xf32>
    %174 = arith.addf %172, %173 : vector<8x128xf32>
    %175 = vector.broadcast %109 : i32 to vector<8x1xi32>
    %176 = arith.cmpi slt, %175, %3 : vector<8x1xi32>
    %177 = vector.broadcast %110 : i32 to vector<8x1xi32>
    %178 = arith.cmpi slt, %177, %3 : vector<8x1xi32>
    %179 = vector.shape_cast %176 : vector<8x1xi1> to vector<8x1xi1>
    %180 = vector.broadcast %179 : vector<8x1xi1> to vector<8x128xi1>
    %181 = arith.select %180, %169, %88 : vector<8x128xi1>, vector<8x128xf32>
    %182 = vector.shape_cast %178 : vector<8x1xi1> to vector<8x1xi1>
    %183 = vector.broadcast %182 : vector<8x1xi1> to vector<8x128xi1>
    %184 = arith.select %183, %174, %91 : vector<8x128xi1>, vector<8x128xf32>
    %cst_51 = arith.constant 0.000000e+00 : f32
    %185 = vector.shape_cast %176 : vector<8x1xi1> to vector<8x1xi1>
    %186 = vector.broadcast %185 : vector<8x1xi1> to vector<8x128xi1>
    %187 = vector.broadcast %cst_51 : f32 to vector<8x128xf32>
    %188 = arith.select %186, %181, %187 : vector<8x128xi1>, vector<8x128xf32>
    %189 = arith.index_cast %c1_i32_33 : i32 to index
    %c0_52 = arith.constant 0 : index
    %c0_53 = arith.constant 0 : index
    %190 = vector.load %arg10[%189, %c0_52, %c0_53] : memref<4x8x128xf32, #tpu.memory_space<vmem>>, vector<1x8x128xf32>
    %191 = vector.shape_cast %190 : vector<1x8x128xf32> to vector<8x128xf32>
    %192 = vector.shape_cast %188 : vector<8x128xf32> to vector<1x8x128xf32>
    tpu.vector_store %arg10[%189, %c0_52, %c0_53], %192 {strides = array<i32>} : memref<4x8x128xf32, #tpu.memory_space<vmem>>, vector<1x8x128xf32>,
    %cst_54 = arith.constant 0.000000e+00 : f32
    %193 = vector.shape_cast %178 : vector<8x1xi1> to vector<8x1xi1>
    %194 = vector.broadcast %193 : vector<8x1xi1> to vector<8x128xi1>
    %195 = vector.broadcast %cst_54 : f32 to vector<8x128xf32>
    %196 = arith.select %194, %184, %195 : vector<8x128xi1>, vector<8x128xf32>
    %197 = arith.index_cast %108 : i32 to index
    %c0_55 = arith.constant 0 : index
    %c0_56 = arith.constant 0 : index
    %198 = vector.load %arg11[%197, %c0_55, %c0_56] : memref<4x8x128xf32, #tpu.memory_space<vmem>>, vector<1x8x128xf32>
    %199 = vector.shape_cast %198 : vector<1x8x128xf32> to vector<8x128xf32>
    %200 = vector.shape_cast %196 : vector<8x128xf32> to vector<1x8x128xf32>
    tpu.vector_store %arg11[%197, %c0_55, %c0_56], %200 {strides = array<i32>} : memref<4x8x128xf32, #tpu.memory_space<vmem>>, vector<1x8x128xf32>,
    %c2_i32 = arith.constant 2 : i32
    %c3_i32_57 = arith.constant 3 : i32
    %201 = arith.subi %c3_i32_57, %c2_i32 : i32
    %202 = arith.addi %10, %c2_i32 : i32
    %203 = arith.addi %12, %201 : i32
    %204 = arith.index_cast %c2_i32 : i32 to index
    %c0_58 = arith.constant 0 : index
    %c0_59 = arith.constant 0 : index
    %205 = vector.load %arg2[%204, %c0_58, %c0_59] : memref<4x8x384xf32, #tpu.memory_space<vmem>>, vector<1x8x384xf32>
    %206 = vector.shape_cast %205 : vector<1x8x384xf32> to vector<8x384xf32>
    %207 = arith.index_cast %201 : i32 to index
    %c0_60 = arith.constant 0 : index
    %c0_61 = arith.constant 0 : index
    %208 = vector.load %arg3[%207, %c0_60, %c0_61] : memref<4x8x384xf32, #tpu.memory_space<vmem>>, vector<1x8x384xf32>
    %209 = vector.shape_cast %208 : vector<1x8x384xf32> to vector<8x384xf32>
    %c0_62 = arith.constant 0 : index
    %c0_63 = arith.constant 0 : index
    %210 = vector.load %arg4[%c0_62, %c0_63] : memref<128x384xf32, #tpu.memory_space<vmem>>, vector<128x384xf32>
    %cst_64 = arith.constant dense<0.000000e+00> : vector<8x384xf32>
    %211 = tpu.matmul %181, %210, %cst_64 {dimension_numbers = #tpu.dot_dimension_numbers<[1], [0], [0], [1], [0, 0, 1, 1], [], []>} : vector<8x128xf32>, vector<128x384xf32>, vector<8x384xf32> -> vector<8x384xf32>
    %c0_65 = arith.constant 0 : index
    %c0_66 = arith.constant 0 : index
    %212 = vector.load %arg5[%c0_65, %c0_66] : memref<128x384xf32, #tpu.memory_space<vmem>>, vector<128x384xf32>
    %cst_67 = arith.constant dense<0.000000e+00> : vector<8x384xf32>
    %213 = tpu.matmul %184, %212, %cst_67 {dimension_numbers = #tpu.dot_dimension_numbers<[1], [0], [0], [1], [0, 0, 1, 1], [], []>} : vector<8x128xf32>, vector<128x384xf32>, vector<8x384xf32> -> vector<8x384xf32>
    %214 = vector.extract_strided_slice %206 {offsets = [0, 0], sizes = [8, 128], strides = [1, 1]} : vector<8x384xf32> to vector<8x128xf32>
    %215 = vector.extract_strided_slice %211 {offsets = [0, 0], sizes = [8, 128], strides = [1, 1]} : vector<8x384xf32> to vector<8x128xf32>
    %216 = arith.addf %214, %215 : vector<8x128xf32>
    %217 = arith.negf %216 : vector<8x128xf32>
    %218 = math.exp %217 : vector<8x128xf32>
    %cst_68 = arith.constant 1.000000e+00 : f32
    %219 = vector.broadcast %cst_68 : f32 to vector<8x128xf32>
    %220 = arith.addf %219, %218 : vector<8x128xf32>
    %221 = arith.divf %219, %220 : vector<8x128xf32>
    %222 = vector.extract_strided_slice %209 {offsets = [0, 0], sizes = [8, 128], strides = [1, 1]} : vector<8x384xf32> to vector<8x128xf32>
    %223 = vector.extract_strided_slice %213 {offsets = [0, 0], sizes = [8, 128], strides = [1, 1]} : vector<8x384xf32> to vector<8x128xf32>
    %224 = arith.addf %222, %223 : vector<8x128xf32>
    %225 = arith.negf %224 : vector<8x128xf32>
    %226 = math.exp %225 : vector<8x128xf32>
    %cst_69 = arith.constant 1.000000e+00 : f32
    %227 = vector.broadcast %cst_69 : f32 to vector<8x128xf32>
    %228 = arith.addf %227, %226 : vector<8x128xf32>
    %229 = arith.divf %227, %228 : vector<8x128xf32>
    %230 = vector.extract_strided_slice %206 {offsets = [0, 128], sizes = [8, 128], strides = [1, 1]} : vector<8x384xf32> to vector<8x128xf32>
    %231 = vector.extract_strided_slice %211 {offsets = [0, 128], sizes = [8, 128], strides = [1, 1]} : vector<8x384xf32> to vector<8x128xf32>
    %232 = arith.addf %230, %231 : vector<8x128xf32>
    %233 = arith.negf %232 : vector<8x128xf32>
    %234 = math.exp %233 : vector<8x128xf32>
    %cst_70 = arith.constant 1.000000e+00 : f32
    %235 = vector.broadcast %cst_70 : f32 to vector<8x128xf32>
    %236 = arith.addf %235, %234 : vector<8x128xf32>
    %237 = arith.divf %235, %236 : vector<8x128xf32>
    %238 = vector.extract_strided_slice %209 {offsets = [0, 128], sizes = [8, 128], strides = [1, 1]} : vector<8x384xf32> to vector<8x128xf32>
    %239 = vector.extract_strided_slice %213 {offsets = [0, 128], sizes = [8, 128], strides = [1, 1]} : vector<8x384xf32> to vector<8x128xf32>
    %240 = arith.addf %238, %239 : vector<8x128xf32>
    %241 = arith.negf %240 : vector<8x128xf32>
    %242 = math.exp %241 : vector<8x128xf32>
    %cst_71 = arith.constant 1.000000e+00 : f32
    %243 = vector.broadcast %cst_71 : f32 to vector<8x128xf32>
    %244 = arith.addf %243, %242 : vector<8x128xf32>
    %245 = arith.divf %243, %244 : vector<8x128xf32>
    %246 = vector.extract_strided_slice %206 {offsets = [0, 256], sizes = [8, 128], strides = [1, 1]} : vector<8x384xf32> to vector<8x128xf32>
    %247 = vector.extract_strided_slice %211 {offsets = [0, 256], sizes = [8, 128], strides = [1, 1]} : vector<8x384xf32> to vector<8x128xf32>
    %248 = arith.addf %247, %6 : vector<8x128xf32>
    %249 = arith.mulf %221, %248 : vector<8x128xf32>
    %250 = arith.addf %246, %249 : vector<8x128xf32>
    %251 = math.tanh %250 : vector<8x128xf32>
    %252 = vector.extract_strided_slice %209 {offsets = [0, 256], sizes = [8, 128], strides = [1, 1]} : vector<8x384xf32> to vector<8x128xf32>
    %253 = vector.extract_strided_slice %213 {offsets = [0, 256], sizes = [8, 128], strides = [1, 1]} : vector<8x384xf32> to vector<8x128xf32>
    %254 = arith.addf %253, %9 : vector<8x128xf32>
    %255 = arith.mulf %229, %254 : vector<8x128xf32>
    %256 = arith.addf %252, %255 : vector<8x128xf32>
    %257 = math.tanh %256 : vector<8x128xf32>
    %cst_72 = arith.constant 1.000000e+00 : f32
    %258 = vector.broadcast %cst_72 : f32 to vector<8x128xf32>
    %259 = arith.subf %258, %237 : vector<8x128xf32>
    %260 = arith.mulf %259, %251 : vector<8x128xf32>
    %261 = arith.mulf %237, %181 : vector<8x128xf32>
    %262 = arith.addf %260, %261 : vector<8x128xf32>
    %cst_73 = arith.constant 1.000000e+00 : f32
    %263 = vector.broadcast %cst_73 : f32 to vector<8x128xf32>
    %264 = arith.subf %263, %245 : vector<8x128xf32>
    %265 = arith.mulf %264, %257 : vector<8x128xf32>
    %266 = arith.mulf %245, %184 : vector<8x128xf32>
    %267 = arith.addf %265, %266 : vector<8x128xf32>
    %268 = vector.broadcast %202 : i32 to vector<8x1xi32>
    %269 = arith.cmpi slt, %268, %3 : vector<8x1xi32>
    %270 = vector.broadcast %203 : i32 to vector<8x1xi32>
    %271 = arith.cmpi slt, %270, %3 : vector<8x1xi32>
    %272 = vector.shape_cast %269 : vector<8x1xi1> to vector<8x1xi1>
    %273 = vector.broadcast %272 : vector<8x1xi1> to vector<8x128xi1>
    %274 = arith.select %273, %262, %181 : vector<8x128xi1>, vector<8x128xf32>
    %275 = vector.shape_cast %271 : vector<8x1xi1> to vector<8x1xi1>
    %276 = vector.broadcast %275 : vector<8x1xi1> to vector<8x128xi1>
    %277 = arith.select %276, %267, %184 : vector<8x128xi1>, vector<8x128xf32>
    %cst_74 = arith.constant 0.000000e+00 : f32
    %278 = vector.shape_cast %269 : vector<8x1xi1> to vector<8x1xi1>
    %279 = vector.broadcast %278 : vector<8x1xi1> to vector<8x128xi1>
    %280 = vector.broadcast %cst_74 : f32 to vector<8x128xf32>
    %281 = arith.select %279, %274, %280 : vector<8x128xi1>, vector<8x128xf32>
    %282 = arith.index_cast %c2_i32 : i32 to index
    %c0_75 = arith.constant 0 : index
    %c0_76 = arith.constant 0 : index
    %283 = vector.load %arg10[%282, %c0_75, %c0_76] : memref<4x8x128xf32, #tpu.memory_space<vmem>>, vector<1x8x128xf32>
    %284 = vector.shape_cast %283 : vector<1x8x128xf32> to vector<8x128xf32>
    %285 = vector.shape_cast %281 : vector<8x128xf32> to vector<1x8x128xf32>
    tpu.vector_store %arg10[%282, %c0_75, %c0_76], %285 {strides = array<i32>} : memref<4x8x128xf32, #tpu.memory_space<vmem>>, vector<1x8x128xf32>,
    %cst_77 = arith.constant 0.000000e+00 : f32
    %286 = vector.shape_cast %271 : vector<8x1xi1> to vector<8x1xi1>
    %287 = vector.broadcast %286 : vector<8x1xi1> to vector<8x128xi1>
    %288 = vector.broadcast %cst_77 : f32 to vector<8x128xf32>
    %289 = arith.select %287, %277, %288 : vector<8x128xi1>, vector<8x128xf32>
    %290 = arith.index_cast %201 : i32 to index
    %c0_78 = arith.constant 0 : index
    %c0_79 = arith.constant 0 : index
    %291 = vector.load %arg11[%290, %c0_78, %c0_79] : memref<4x8x128xf32, #tpu.memory_space<vmem>>, vector<1x8x128xf32>
    %292 = vector.shape_cast %291 : vector<1x8x128xf32> to vector<8x128xf32>
    %293 = vector.shape_cast %289 : vector<8x128xf32> to vector<1x8x128xf32>
    tpu.vector_store %arg11[%290, %c0_78, %c0_79], %293 {strides = array<i32>} : memref<4x8x128xf32, #tpu.memory_space<vmem>>, vector<1x8x128xf32>,
    %c3_i32_80 = arith.constant 3 : i32
    %c3_i32_81 = arith.constant 3 : i32
    %294 = arith.subi %c3_i32_81, %c3_i32_80 : i32
    %295 = arith.addi %10, %c3_i32_80 : i32
    %296 = arith.addi %12, %294 : i32
    %297 = arith.index_cast %c3_i32_80 : i32 to index
    %c0_82 = arith.constant 0 : index
    %c0_83 = arith.constant 0 : index
    %298 = vector.load %arg2[%297, %c0_82, %c0_83] : memref<4x8x384xf32, #tpu.memory_space<vmem>>, vector<1x8x384xf32>
    %299 = vector.shape_cast %298 : vector<1x8x384xf32> to vector<8x384xf32>
    %300 = arith.index_cast %294 : i32 to index
    %c0_84 = arith.constant 0 : index
    %c0_85 = arith.constant 0 : index
    %301 = vector.load %arg3[%300, %c0_84, %c0_85] : memref<4x8x384xf32, #tpu.memory_space<vmem>>, vector<1x8x384xf32>
    %302 = vector.shape_cast %301 : vector<1x8x384xf32> to vector<8x384xf32>
    %c0_86 = arith.constant 0 : index
    %c0_87 = arith.constant 0 : index
    %303 = vector.load %arg4[%c0_86, %c0_87] : memref<128x384xf32, #tpu.memory_space<vmem>>, vector<128x384xf32>
    %cst_88 = arith.constant dense<0.000000e+00> : vector<8x384xf32>
    %304 = tpu.matmul %274, %303, %cst_88 {dimension_numbers = #tpu.dot_dimension_numbers<[1], [0], [0], [1], [0, 0, 1, 1], [], []>} : vector<8x128xf32>, vector<128x384xf32>, vector<8x384xf32> -> vector<8x384xf32>
    %c0_89 = arith.constant 0 : index
    %c0_90 = arith.constant 0 : index
    %305 = vector.load %arg5[%c0_89, %c0_90] : memref<128x384xf32, #tpu.memory_space<vmem>>, vector<128x384xf32>
    %cst_91 = arith.constant dense<0.000000e+00> : vector<8x384xf32>
    %306 = tpu.matmul %277, %305, %cst_91 {dimension_numbers = #tpu.dot_dimension_numbers<[1], [0], [0], [1], [0, 0, 1, 1], [], []>} : vector<8x128xf32>, vector<128x384xf32>, vector<8x384xf32> -> vector<8x384xf32>
    %307 = vector.extract_strided_slice %299 {offsets = [0, 0], sizes = [8, 128], strides = [1, 1]} : vector<8x384xf32> to vector<8x128xf32>
    %308 = vector.extract_strided_slice %304 {offsets = [0, 0], sizes = [8, 128], strides = [1, 1]} : vector<8x384xf32> to vector<8x128xf32>
    %309 = arith.addf %307, %308 : vector<8x128xf32>
    %310 = arith.negf %309 : vector<8x128xf32>
    %311 = math.exp %310 : vector<8x128xf32>
    %cst_92 = arith.constant 1.000000e+00 : f32
    %312 = vector.broadcast %cst_92 : f32 to vector<8x128xf32>
    %313 = arith.addf %312, %311 : vector<8x128xf32>
    %314 = arith.divf %312, %313 : vector<8x128xf32>
    %315 = vector.extract_strided_slice %302 {offsets = [0, 0], sizes = [8, 128], strides = [1, 1]} : vector<8x384xf32> to vector<8x128xf32>
    %316 = vector.extract_strided_slice %306 {offsets = [0, 0], sizes = [8, 128], strides = [1, 1]} : vector<8x384xf32> to vector<8x128xf32>
    %317 = arith.addf %315, %316 : vector<8x128xf32>
    %318 = arith.negf %317 : vector<8x128xf32>
    %319 = math.exp %318 : vector<8x128xf32>
    %cst_93 = arith.constant 1.000000e+00 : f32
    %320 = vector.broadcast %cst_93 : f32 to vector<8x128xf32>
    %321 = arith.addf %320, %319 : vector<8x128xf32>
    %322 = arith.divf %320, %321 : vector<8x128xf32>
    %323 = vector.extract_strided_slice %299 {offsets = [0, 128], sizes = [8, 128], strides = [1, 1]} : vector<8x384xf32> to vector<8x128xf32>
    %324 = vector.extract_strided_slice %304 {offsets = [0, 128], sizes = [8, 128], strides = [1, 1]} : vector<8x384xf32> to vector<8x128xf32>
    %325 = arith.addf %323, %324 : vector<8x128xf32>
    %326 = arith.negf %325 : vector<8x128xf32>
    %327 = math.exp %326 : vector<8x128xf32>
    %cst_94 = arith.constant 1.000000e+00 : f32
    %328 = vector.broadcast %cst_94 : f32 to vector<8x128xf32>
    %329 = arith.addf %328, %327 : vector<8x128xf32>
    %330 = arith.divf %328, %329 : vector<8x128xf32>
    %331 = vector.extract_strided_slice %302 {offsets = [0, 128], sizes = [8, 128], strides = [1, 1]} : vector<8x384xf32> to vector<8x128xf32>
    %332 = vector.extract_strided_slice %306 {offsets = [0, 128], sizes = [8, 128], strides = [1, 1]} : vector<8x384xf32> to vector<8x128xf32>
    %333 = arith.addf %331, %332 : vector<8x128xf32>
    %334 = arith.negf %333 : vector<8x128xf32>
    %335 = math.exp %334 : vector<8x128xf32>
    %cst_95 = arith.constant 1.000000e+00 : f32
    %336 = vector.broadcast %cst_95 : f32 to vector<8x128xf32>
    %337 = arith.addf %336, %335 : vector<8x128xf32>
    %338 = arith.divf %336, %337 : vector<8x128xf32>
    %339 = vector.extract_strided_slice %299 {offsets = [0, 256], sizes = [8, 128], strides = [1, 1]} : vector<8x384xf32> to vector<8x128xf32>
    %340 = vector.extract_strided_slice %304 {offsets = [0, 256], sizes = [8, 128], strides = [1, 1]} : vector<8x384xf32> to vector<8x128xf32>
    %341 = arith.addf %340, %6 : vector<8x128xf32>
    %342 = arith.mulf %314, %341 : vector<8x128xf32>
    %343 = arith.addf %339, %342 : vector<8x128xf32>
    %344 = math.tanh %343 : vector<8x128xf32>
    %345 = vector.extract_strided_slice %302 {offsets = [0, 256], sizes = [8, 128], strides = [1, 1]} : vector<8x384xf32> to vector<8x128xf32>
    %346 = vector.extract_strided_slice %306 {offsets = [0, 256], sizes = [8, 128], strides = [1, 1]} : vector<8x384xf32> to vector<8x128xf32>
    %347 = arith.addf %346, %9 : vector<8x128xf32>
    %348 = arith.mulf %322, %347 : vector<8x128xf32>
    %349 = arith.addf %345, %348 : vector<8x128xf32>
    %350 = math.tanh %349 : vector<8x128xf32>
    %cst_96 = arith.constant 1.000000e+00 : f32
    %351 = vector.broadcast %cst_96 : f32 to vector<8x128xf32>
    %352 = arith.subf %351, %330 : vector<8x128xf32>
    %353 = arith.mulf %352, %344 : vector<8x128xf32>
    %354 = arith.mulf %330, %274 : vector<8x128xf32>
    %355 = arith.addf %353, %354 : vector<8x128xf32>
    %cst_97 = arith.constant 1.000000e+00 : f32
    %356 = vector.broadcast %cst_97 : f32 to vector<8x128xf32>
    %357 = arith.subf %356, %338 : vector<8x128xf32>
    %358 = arith.mulf %357, %350 : vector<8x128xf32>
    %359 = arith.mulf %338, %277 : vector<8x128xf32>
    %360 = arith.addf %358, %359 : vector<8x128xf32>
    %361 = vector.broadcast %295 : i32 to vector<8x1xi32>
    %362 = arith.cmpi slt, %361, %3 : vector<8x1xi32>
    %363 = vector.broadcast %296 : i32 to vector<8x1xi32>
    %364 = arith.cmpi slt, %363, %3 : vector<8x1xi32>
    %365 = vector.shape_cast %362 : vector<8x1xi1> to vector<8x1xi1>
    %366 = vector.broadcast %365 : vector<8x1xi1> to vector<8x128xi1>
    %367 = arith.select %366, %355, %274 : vector<8x128xi1>, vector<8x128xf32>
    %368 = vector.shape_cast %364 : vector<8x1xi1> to vector<8x1xi1>
    %369 = vector.broadcast %368 : vector<8x1xi1> to vector<8x128xi1>
    %370 = arith.select %369, %360, %277 : vector<8x128xi1>, vector<8x128xf32>
    %cst_98 = arith.constant 0.000000e+00 : f32
    %371 = vector.shape_cast %362 : vector<8x1xi1> to vector<8x1xi1>
    %372 = vector.broadcast %371 : vector<8x1xi1> to vector<8x128xi1>
    %373 = vector.broadcast %cst_98 : f32 to vector<8x128xf32>
    %374 = arith.select %372, %367, %373 : vector<8x128xi1>, vector<8x128xf32>
    %375 = arith.index_cast %c3_i32_80 : i32 to index
    %c0_99 = arith.constant 0 : index
    %c0_100 = arith.constant 0 : index
    %376 = vector.load %arg10[%375, %c0_99, %c0_100] : memref<4x8x128xf32, #tpu.memory_space<vmem>>, vector<1x8x128xf32>
    %377 = vector.shape_cast %376 : vector<1x8x128xf32> to vector<8x128xf32>
    %378 = vector.shape_cast %374 : vector<8x128xf32> to vector<1x8x128xf32>
    tpu.vector_store %arg10[%375, %c0_99, %c0_100], %378 {strides = array<i32>} : memref<4x8x128xf32, #tpu.memory_space<vmem>>, vector<1x8x128xf32>,
    %cst_101 = arith.constant 0.000000e+00 : f32
    %379 = vector.shape_cast %364 : vector<8x1xi1> to vector<8x1xi1>
    %380 = vector.broadcast %379 : vector<8x1xi1> to vector<8x128xi1>
    %381 = vector.broadcast %cst_101 : f32 to vector<8x128xf32>
    %382 = arith.select %380, %370, %381 : vector<8x128xi1>, vector<8x128xf32>
    %383 = arith.index_cast %294 : i32 to index
    %c0_102 = arith.constant 0 : index
    %c0_103 = arith.constant 0 : index
    %384 = vector.load %arg11[%383, %c0_102, %c0_103] : memref<4x8x128xf32, #tpu.memory_space<vmem>>, vector<1x8x128xf32>
    %385 = vector.shape_cast %384 : vector<1x8x128xf32> to vector<8x128xf32>
    %386 = vector.shape_cast %382 : vector<8x128xf32> to vector<1x8x128xf32>
    tpu.vector_store %arg11[%383, %c0_102, %c0_103], %386 {strides = array<i32>} : memref<4x8x128xf32, #tpu.memory_space<vmem>>, vector<1x8x128xf32>,
    %c4_i32_104 = arith.constant 4 : i32
    %c0_105 = arith.constant 0 : index
    %c0_106 = arith.constant 0 : index
    %387 = vector.load %arg13[%c0_105, %c0_106] : memref<8x128xf32, #tpu.memory_space<vmem>>, vector<8x128xf32>
    tpu.vector_store %arg13[%c0_105, %c0_106], %367 {strides = array<i32>} : memref<8x128xf32, #tpu.memory_space<vmem>>, vector<8x128xf32>,
    %c0_107 = arith.constant 0 : index
    %c0_108 = arith.constant 0 : index
    %388 = vector.load %arg14[%c0_107, %c0_108] : memref<8x128xf32, #tpu.memory_space<vmem>>, vector<8x128xf32>
    tpu.vector_store %arg14[%c0_107, %c0_108], %370 {strides = array<i32>} : memref<8x128xf32, #tpu.memory_space<vmem>>, vector<8x128xf32>,
    %c1_i32_109 = arith.constant 1 : i32
    %389 = arith.cmpi eq, %arg0, %c1_i32_109 : i32
    %390 = arith.extui %389 : i1 to i32
    %c0_i32_110 = arith.constant 0 : i32
    %391 = arith.cmpi ne, %390, %c0_i32_110 : i32
    scf.if %391 {
      %392 = tpu.concatenate %367, %370 in 1 : vector<8x128xf32>, vector<8x128xf32> -> vector<8x256xf32>
      %c0_111 = arith.constant 0 : index
      %c0_112 = arith.constant 0 : index
      %393 = vector.load %arg8[%c0_111, %c0_112] : memref<256x128xf32, #tpu.memory_space<vmem>>, vector<256x128xf32>
      %cst_113 = arith.constant dense<0.000000e+00> : vector<8x128xf32>
      %394 = tpu.matmul %392, %393, %cst_113 {dimension_numbers = #tpu.dot_dimension_numbers<[1], [0], [0], [1], [0, 0, 1, 1], [], []>} : vector<8x256xf32>, vector<256x128xf32>, vector<8x128xf32> -> vector<8x128xf32>
      %c0_114 = arith.constant 0 : index
      %c0_115 = arith.constant 0 : index
      %395 = vector.load %arg9[%c0_114, %c0_115] : memref<1x128xf32, #tpu.memory_space<vmem>>, vector<1x128xf32>
      %396 = vector.broadcast %395 : vector<1x128xf32> to vector<8x128xf32>
      %397 = arith.addf %394, %396 : vector<8x128xf32>
      %398 = math.tanh %397 : vector<8x128xf32>
      %c0_116 = arith.constant 0 : index
      %c0_117 = arith.constant 0 : index
      %399 = vector.load %arg12[%c0_116, %c0_117] : memref<8x128xf32, #tpu.memory_space<vmem>>, vector<8x128xf32>
      tpu.vector_store %arg12[%c0_116, %c0_117], %398 {strides = array<i32>} : memref<8x128xf32, #tpu.memory_space<vmem>>, vector<8x128xf32>,
    } else {
    }
    return
  }
  func.func @transform_0(%arg0: i32) -> (i32, i32) {
    %c0_i32 = arith.constant 0 : i32
    %c0_i32_0 = arith.constant 0 : i32
    %c0_i32_1 = arith.constant 0 : i32
    return %c0_i32, %c0_i32_0 : i32, i32
  }
  func.func @transform_1(%arg0: i32) -> (i32, i32, i32) {
    %c0_i32 = arith.constant 0 : i32
    %c0_i32_0 = arith.constant 0 : i32
    %c0_i32_1 = arith.constant 0 : i32
    return %arg0, %c0_i32, %c0_i32_0 : i32, i32, i32
  }
  func.func @transform_2(%arg0: i32) -> (i32, i32, i32) {
    %c1_i32 = arith.constant 1 : i32
    %0 = arith.subi %c1_i32, %arg0 : i32
    %c0_i32 = arith.constant 0 : i32
    %c0_i32_0 = arith.constant 0 : i32
    %c0_i32_1 = arith.constant 0 : i32
    return %0, %c0_i32, %c0_i32_0 : i32, i32, i32
  }
  func.func @transform_3(%arg0: i32) -> (i32, i32) {
    %c0_i32 = arith.constant 0 : i32
    %c0_i32_0 = arith.constant 0 : i32
    %c0_i32_1 = arith.constant 0 : i32
    return %c0_i32, %c0_i32_0 : i32, i32
  }
  func.func @transform_4(%arg0: i32) -> (i32, i32) {
    %c0_i32 = arith.constant 0 : i32
    %c0_i32_0 = arith.constant 0 : i32
    %c0_i32_1 = arith.constant 0 : i32
    return %c0_i32, %c0_i32_0 : i32, i32
  }
  func.func @transform_5(%arg0: i32) -> (i32, i32) {
    %c0_i32 = arith.constant 0 : i32
    %c0_i32_0 = arith.constant 0 : i32
    %c0_i32_1 = arith.constant 0 : i32
    return %c0_i32, %c0_i32_0 : i32, i32
  }
  func.func @transform_6(%arg0: i32) -> (i32, i32) {
    %c0_i32 = arith.constant 0 : i32
    %c0_i32_0 = arith.constant 0 : i32
    %c0_i32_1 = arith.constant 0 : i32
    return %c0_i32, %c0_i32_0 : i32, i32
  }
  func.func @transform_7(%arg0: i32) -> (i32, i32) {
    %c0_i32 = arith.constant 0 : i32
    %c0_i32_0 = arith.constant 0 : i32
    %c0_i32_1 = arith.constant 0 : i32
    return %c0_i32, %c0_i32_0 : i32, i32
  }
  func.func @transform_8(%arg0: i32) -> (i32, i32) {
    %c0_i32 = arith.constant 0 : i32
    %c0_i32_0 = arith.constant 0 : i32
    %c0_i32_1 = arith.constant 0 : i32
    return %c0_i32, %c0_i32_0 : i32, i32
  }
  func.func @transform_9(%arg0: i32) -> (i32, i32, i32) {
    %c0_i32 = arith.constant 0 : i32
    %c0_i32_0 = arith.constant 0 : i32
    %c0_i32_1 = arith.constant 0 : i32
    return %arg0, %c0_i32, %c0_i32_0 : i32, i32, i32
  }
  func.func @transform_10(%arg0: i32) -> (i32, i32, i32) {
    %c1_i32 = arith.constant 1 : i32
    %0 = arith.subi %c1_i32, %arg0 : i32
    %c0_i32 = arith.constant 0 : i32
    %c0_i32_0 = arith.constant 0 : i32
    %c0_i32_1 = arith.constant 0 : i32
    return %0, %c0_i32, %c0_i32_0 : i32, i32, i32
  }
  func.func @transform_11(%arg0: i32) -> (i32, i32) {
    %c0_i32 = arith.constant 0 : i32
    %c0_i32_0 = arith.constant 0 : i32
    %c0_i32_1 = arith.constant 0 : i32
    return %c0_i32, %c0_i32_0 : i32, i32
  }
}

</mosaic_0001>

<bundles_post_ra>
// kernel: protein_en_forward.1
= control target key start
LH: loop header
LB: loop body
LE: loop exit
PB: predicated region body
PF: predicated region fallthrough
CT: control target
= control target key end

     0   :  { %s2258_s17 = smov 0   ;;  %s3993_s0 = inlined_call_operand.vmem [shape: s32[8,1], index: 0, kind: input, shape index: {}]   ;;  %s3994_s1 = inlined_call_operand.vmem [shape: f32[8,8,384], index: 1, kind: input, shape index: {}]   ;;  %s3995_s2 = inlined_call_operand.vmem [shape: f32[8,8,384], index: 2, kind: input, shape index: {}]   ;;  %s3996_s3 = inlined_call_operand.vmem [shape: f32[128,384], index: 3, kind: input, shape index: {}]   ;;  %s3997_s4 = inlined_call_operand.vmem [shape: f32[128,384], index: 4, kind: input, shape index: {}]   ;;  %s3998_s5 = inlined_call_operand.vmem [shape: f32[1,128], index: 5, kind: input, shape index: {}]   ;;  %s3999_s6 = inlined_call_operand.vmem [shape: f32[1,128], index: 6, kind: input, shape index: {}]   ;;  %s4000_s7 = inlined_call_operand.vmem [shape: f32[256,128], index: 7, kind: input, shape index: {}]   ;;  %s4001_s8 = inlined_call_operand.vmem [shape: f32[1,128], index: 8, kind: input, shape index: {}]   ;;  %s4002_s9 = inlined_call_operand.vmem [shape: f32[8,8,128], index: 9, kind: output, shape index: {0}]   ;;  %s4003_s10 = inlined_call_operand.vmem [shape: f32[8,8,128], index: 10, kind: output, shape index: {1}]   ;;  %s4004_s11 = inlined_call_operand.vmem [shape: f32[8,128], index: 11, kind: output, shape index: {2}]  }
   0x1   :  { %4076 = sst [smem:[#allocation48_spill]] %s4004_s11 }
   0x2 LB: > { %4077 = sst [smem:[#allocation4_spill]] %s2194_s17  ;;  %s2264_s18 = sadd.s32 4294967295, %s2194_s17   ;;  %s2194_s17 = sphi %s2258_s17, %s22_s17  }
   0x3   : > { %p2030_p0 = scmp.ge.s32.totalorder %s2194_s17, 1  ;;  %p357_p1 = scmp.lt.s32.totalorder %s2194_s17, 3 }
   0x5   : > { %p358_p2 = pnand %p2030_p0, %p357_p1 }
   0x7   : > { %361 = sbr.rel (%p358_p2) target bundleno = 950 (0x3b6), region = 56 }
   0xc   : > { %s2269_s19 = sshll.u32 %s2264_s18, 2  ;;  %s418_s20 = ssub.s32 1, %s2264_s18 }
   0xd   : > { %p412_p3 = scmp.lt.s32.totalorder %s2269_s19, 7  ;;  %s2273_s21 = sshll.u32 %s418_s20, 2 }
   0xe   : > { %p420_p4 = scmp.lt.s32.totalorder %s2273_s21, 7  ;;  %p2039_p5 = scmp.ne.s32.totalorder %s2264_s18, 0 }
   0xf   : > { %s413_s22 = scalar_select %p412_p3, %s2269_s19, 7 }
  0x10   : > { %s421_s23 = scalar_select %p420_p4, %s2273_s21, 7 }
  0x11   : > { %s2085_s24 = smul.u32 24, %s413_s22  ;;  %s2036_s25 = sshll.u32 %s413_s22, 3 }
  0x12   : > { %s2086_s26 = smul.u32 24, %s421_s23  ;;  %s2281_s29 = scalar_lea.vmem %s4002_s9, %s2036_s25 }
  0x13   : > { %s2286_s13 = scalar_lea.vmem %s3994_s1, %s2085_s24  ;;  %s2038_s14 = sshll.u32 %s421_s23, 3 }
  0x14   : > { %s2291_s20 = scalar_lea.vmem %s3995_s2, %s2086_s26  ;;  %s2296_s22 = scalar_lea.vmem %s4003_s10, %s2038_s14 }
  0x15   : > { %444 = sbr.rel (%p2039_p5) target bundleno = 29 (0x1d), region = 60 }
  0x1a   : > { %v2196_v0 = vmov 0.0  }
  0x1b   : > { %445 = vst [vmem:[#allocation2] sm:$0xff] %v2196_v0 }
  0x1c   : > { %446 = vst [vmem:[#allocation3] sm:$0xff] %v2196_v0 }
  0x1d PF: > { %v2302_v1 = vld [vmem:[%s3996_s3 + $0x168] sm:$0xff]  ;;  %v2307_v2 = vld [vmem:[%s3996_s3 + $0x150] sm:$0xff]  ;;  %v2324_v5 = vld [vmem:[%s3996_s3 + $0x138] sm:$0xff]  ;;  %s461_s30 = sadd.s32 3, %s2273_s21  ;;  %s1490_s17 = sadd.s32 3, %s2269_s19 }
  0x1e   : > { %v2312_v3 = vld [vmem:[%s3997_s4 + $0x168] sm:$0xff]  ;;  %517 = vmatpush.msra.mxu0 %v2302_v1  ;;  %v2319_v4 = vld [vmem:[%s3997_s4 + $0x150] sm:$0xff]  ;;  %v2334_v7 = vld [vmem:[%s3997_s4 + $0x138] sm:$0xff]  ;;  %s802_s26 = sadd.s32 1, %s2269_s19  ;;  %s803_s11 = sadd.s32 2, %s2273_s21 }
  0x1f   : > { %625 = vmatpush.msra.mxu3 %v2312_v3  ;;  %v2329_v6 = vld [vmem:[%s3996_s3 + $0x170] sm:$0xff]  ;;  %v2341_v8 = vld [vmem:[%s3996_s3 + $0x158] sm:$0xff]  ;;  %v2346_v9 = vld [vmem:[%s3996_s3 + $0x120] sm:$0xff]  ;;  %p2082_p6 = scmp.ne.s32.totalorder %s2264_s18, 1 }
  0x20   : > { %518 = vmatpush.msra.mxu0 %v2307_v2  ;;  %537 = vmatpush.msra.mxu1 %v2329_v6  ;;  %v2352_v10 = vld [vmem:[%s3997_s4 + $0x120] sm:$0xff]  ;;  %v2364_v12 = vld [vmem:[%s3996_s3 + $0x108] sm:$0xff]  ;;  %v2382_v15 = vld [vmem:[%s3996_s3 + $0xf0] sm:$0xff]  ;;  %s4221_s18 = sld [smem:[#allocation48_spill]] (!%p2082_p6) }
  0x21   : > { %626 = vmatpush.msra.mxu3 %v2319_v4  ;;  %v2359_v11 = vld [vmem:[%s3996_s3 + $0x140] sm:$0xff]  ;;  %v2370_v13 = vld [vmem:[%s3997_s4 + $0x108] sm:$0xff]  ;;  %v2388_v16 = vld [vmem:[%s3997_s4 + $0xf0] sm:$0xff] }
  0x22   : > { %519 = vmatpush.msra.mxu0 %v2324_v5  ;;  %538 = vmatpush.msra.mxu1 %v2341_v8  ;;  %v2377_v14 = vld [vmem:[%s3996_s3 + $0x128] sm:$0xff]  ;;  %v2395_v17 = vld [vmem:[%s3996_s3 + $0x110] sm:$0xff]  ;;  %v2400_v18 = vld [vmem:[%s3996_s3 + $0xd8] sm:$0xff] }
  0x23   : > { %627 = vmatpush.msra.mxu3 %v2334_v7  ;;  %v2406_v19 = vld [vmem:[%s3997_s4 + $0xd8] sm:$0xff]  ;;  %v2423_v22 = vld [vmem:[%s3996_s3 + $0x160] sm:$0xff]  ;;  %v2447_v26 = vld [vmem:[%s3996_s3 + $0x148] sm:$0xff] }
  0x24   : > { %520 = vmatpush.msra.mxu0 %v2346_v9  ;;  %539 = vmatpush.msra.mxu1 %v2359_v11  ;;  %v2411_v20 = vld [vmem:[%s3996_s3 + $0x178] sm:$0xff]  ;;  %v2428_v23 = vld [vmem:[%s3996_s3 + $0xc0] sm:$0xff]  ;;  %v2452_v27 = vld [vmem:[%s3996_s3 + $0xa8] sm:$0xff] }
  0x25   : > { %628 = vmatpush.msra.mxu3 %v2352_v10  ;;  %v2418_v21 = vld [vmem:[%s3996_s3 + $0xf8] sm:$0xff]  ;;  %v2434_v24 = vld [vmem:[%s3997_s4 + $0xc0] sm:$0xff]  ;;  %557 = vmatpush.msra.mxu2 %v2411_v20  ;;  %v2458_v28 = vld [vmem:[%s3997_s4 + $0xa8] sm:$0xff] }
  0x26   : > { %521 = vmatpush.msra.mxu0 %v2364_v12  ;;  %540 = vmatpush.msra.mxu1 %v2377_v14  ;;  %4078 = vst [vmem:[#allocation5_spill] sm:$0xff] %v2434_v24  ;;  %v2442_v25 = vld [vmem:[%s3996_s3 + $0xe0] sm:$0xff]  ;;  %v2466_v29 = vld [vmem:[%s3996_s3 + $0xc8] sm:$0xff]  ;;  %v2471_v30 = vld [vmem:[%s3996_s3 + $0x130] sm:$0xff] }
  0x27   : > { %629 = vmatpush.msra.mxu3 %v2370_v13  ;;  %4079 = vst [vmem:[#allocation6_spill] sm:$0xff] %v2458_v28  ;;  %558 = vmatpush.msra.mxu2 %v2423_v22  ;;  %v2476_v31 = vld [vmem:[%s3996_s3 + $0x90] sm:$0xff]  ;;  %v2495_v34 = vld [vmem:[%s3996_s3 + $0x118] sm:$0xff]  ;;  %v2519_v38 = vld [vmem:[%s3996_s3 + $0x100] sm:$0xff] }
  0x28   : > { %522 = vmatpush.msra.mxu0 %v2382_v15  ;;  %541 = vmatpush.msra.mxu1 %v2395_v17  ;;  %v2482_v32 = vld [vmem:[%s3997_s4 + $0x90] sm:$0xff]  ;;  %v2500_v35 = vld [vmem:[%s3996_s3 + $0x78] sm:$0xff]  ;;  %v2524_v39 = vld [vmem:[%s3996_s3 + $0x60] sm:$0xff] }
  0x29   : > { %630 = vmatpush.msra.mxu3 %v2388_v16  ;;  %4080 = vst [vmem:[#allocation7_spill] sm:$0xff] %v2482_v32  ;;  %559 = vmatpush.msra.mxu2 %v2447_v26  ;;  %v2490_v33 = vld [vmem:[%s3996_s3 + $0xb0] sm:$0xff]  ;;  %v2506_v36 = vld [vmem:[%s3997_s4 + $0x78] sm:$0xff]  ;;  %v2530_v40 = vld [vmem:[%s3997_s4 + $0x60] sm:$0xff] }
  0x2a   : > { %523 = vmatpush.msra.mxu0 %v2400_v18  ;;  %542 = vmatpush.msra.mxu1 %v2418_v21  ;;  %4081 = vst [vmem:[#allocation8_spill] sm:$0xff] %v2506_v36  ;;  %v2514_v37 = vld [vmem:[%s3996_s3 + $0x98] sm:$0xff]  ;;  %v2538_v41 = vld [vmem:[%s3996_s3 + $0x80] sm:$0xff]  ;;  %v2543_v42 = vld [vmem:[%s3996_s3 + $0xe8] sm:$0xff] }
  0x2b   : > { %631 = vmatpush.msra.mxu3 %v2406_v19  ;;  %560 = vmatpush.msra.mxu2 %v2471_v30  ;;  %4082 = vst [vmem:[#allocation9_spill] sm:$0xff] %v2530_v40  ;;  %v2548_v43 = vld [vmem:[%s3996_s3 + $0x48] sm:$0xff]  ;;  %v2567_v46 = vld [vmem:[%s3996_s3 + $0xd0] sm:$0xff]  ;;  %v2591_v50 = vld [vmem:[%s3996_s3 + $0xb8] sm:$0xff] }
  0x2c   : > { %524 = vmatpush.msra.mxu0 %v2428_v23  ;;  %543 = vmatpush.msra.mxu1 %v2442_v25  ;;  %v2554_v44 = vld [vmem:[%s3997_s4 + $0x48] sm:$0xff]  ;;  %v2572_v47 = vld [vmem:[%s3996_s3 + $0x30] sm:$0xff]  ;;  %v2596_v51 = vld [vmem:[%s3996_s3 + $0x18] sm:$0xff] }
  0x2d   : > { %632 = vmatpush.msra.mxu3 %v2434_v24  ;;  %561 = vmatpush.msra.mxu2 %v2495_v34  ;;  %4083 = vst [vmem:[#allocation10_spill] sm:$0xff] %v2554_v44  ;;  %v2562_v45 = vld [vmem:[%s3996_s3 + $0x68] sm:$0xff]  ;;  %v2578_v48 = vld [vmem:[%s3997_s4 + $0x30] sm:$0xff]  ;;  %v2602_v52 = vld [vmem:[%s3997_s4 + $0x18] sm:$0xff] }
  0x2e   : > { %525 = vmatpush.msra.mxu0 %v2452_v27  ;;  %544 = vmatpush.msra.mxu1 %v2466_v29  ;;  %4084 = vst [vmem:[#allocation11_spill] sm:$0xff] %v2578_v48  ;;  %v2586_v49 = vld [vmem:[%s3996_s3 + $0x50] sm:$0xff]  ;;  %v2610_v53 = vld [vmem:[%s3996_s3 + $0x38] sm:$0xff]  ;;  %v2615_v54 = vld [vmem:[%s3996_s3 + $0xa0] sm:$0xff] }
  0x2f   : > { %633 = vmatpush.msra.mxu3 %v2458_v28  ;;  %562 = vmatpush.msra.mxu2 %v2519_v38  ;;  %4085 = vst [vmem:[#allocation12_spill] sm:$0xff] %v2602_v52  ;;  %v2620_v55 = vld [vmem:[%s3996_s3] sm:$0xff]  ;;  %v2641_v59 = vld [vmem:[%s3997_s4 + $0x170] sm:$0xff]  ;;  %v2644_v60 = vld [vmem:[#allocation3] sm:$0xff] }
  0x30   : > { %526 = vmatpush.msra.mxu0 %v2476_v31  ;;  %545 = vmatpush.msra.mxu1 %v2490_v33  ;;  %4086 = vst [vmem:[#allocation13_spill] sm:$0xff] %v2615_v54  ;;  %v2626_v56 = vld [vmem:[%s3997_s4] sm:$0xff]  ;;  %v2652_v61 = vld [vmem:[%s3996_s3 + $0x8] sm:$0xff]  ;;  %v2663_v63 = vld [vmem:[%s3997_s4 + $0x158] sm:$0xff] }
  0x31   : > { %634 = vmatpush.msra.mxu3 %v2482_v32  ;;  %563 = vmatpush.msra.mxu2 %v2543_v42  ;;  %4087 = vst [vmem:[#allocation14_spill] sm:$0xff] %v2626_v56  ;;  %v2630_v57 = vld [vmem:[#allocation2] sm:$0xff]  ;;  %v2657_v62 = vld [vmem:[%s3996_s3 + $0x88] sm:$0xff]  ;;  %v2669_v0 = vld [vmem:[%s3997_s4 + $0x178] sm:$0xff] }
  0x32   : > { %527 = vmatpush.msra.mxu0 %v2500_v35  ;;  %546 = vmatpush.msra.mxu1 %v2514_v37  ;;  %4088 = vst [vmem:[#allocation15_spill] sm:$0xff] %v2630_v57  ;;  %v2636_v58 = vld [vmem:[%s3996_s3 + $0x20] sm:$0xff]  ;;  %v2707_v32 = vld [vmem:[%s3997_s4 + $0x128] sm:$0xff] }
  0x33   : > { %635 = vmatpush.msra.mxu3 %v2506_v36  ;;  %564 = vmatpush.msra.mxu2 %v2567_v46  ;;  %4089 = vst [vmem:[#allocation16_spill] sm:$0xff] %v2657_v62  ;;  %v2701_v36 = vld [vmem:[%s3996_s3 + $0x58] sm:$0xff]  ;;  %v2713_v28 = vld [vmem:[%s3997_s4 + $0x148] sm:$0xff] }
  0x34   : > { %528 = vmatpush.msra.mxu0 %v2524_v39  ;;  %547 = vmatpush.msra.mxu1 %v2538_v41  ;;  %4090 = vst [vmem:[#allocation17_spill] sm:$0xff] %v2663_v63 }
  0x35   : > { %636 = vmatpush.msra.mxu3 %v2530_v40  ;;  %565 = vmatpush.msra.mxu2 %v2591_v50  ;;  %v781_v40 = vstv %s2269_s19  ;;  %4094 = vst [vmem:[#allocation21_spill] sm:$0xff] %v2701_v36 }
  0x36   : > { %529 = vmatpush.msra.mxu0 %v2548_v43  ;;  %548 = vmatpush.msra.mxu1 %v2562_v45  ;;  %4095 = vst [vmem:[#allocation22_spill] sm:$0xff] %v2707_v32 }
  0x37   : > { %637 = vmatpush.msra.mxu3 %v2554_v44  ;;  %566 = vmatpush.msra.mxu2 %v2615_v54  ;;  %v2693_v44 = vld [vmem:[%s3993_s0] sm:$0xff]  ;;  %4096 = vst [vmem:[#allocation23_spill] sm:$0xff] %v2713_v28  ;;  %v2728_v54 = vld [vmem:[%s3997_s4 + $0x110] sm:$0xff] }
  0x38   : > { %530 = vmatpush.msra.mxu0 %v2572_v47  ;;  %549 = vmatpush.msra.mxu1 %v2586_v49  ;;  %vm782_vm0 = vcmp.lt.s32.totalorder %v781_v40, %v2693_v44  ;;  %v2722_v40 = vld [vmem:[%s3996_s3 + $0x40] sm:$0xff] }
  0x39   : > { %638 = vmatpush.msra.mxu3 %v2578_v48  ;;  %v2687_v48 = vld [vmem:[%s3997_s4 + $0x160] sm:$0xff]  ;;  %567 = vmatpush.msra.mxu2 %v2657_v62  ;;  %4097 = vst [vmem:[#allocation24_spill] sm:$0xff] %v2722_v40  ;;  %v4022_v62 = vmov 0  }
  0x3a   : > { %531 = vmatpush.msra.mxu0 %v2596_v51  ;;  %550 = vmatpush.msra.mxu1 %v2610_v53  ;;  %4093 = vst [vmem:[#allocation20_spill] sm:$0xff] %v2687_v48  ;;  %v785_v24 = vsel %vm782_vm0, 1, %v4022_v62 }
  0x3b   : > { %639 = vmatpush.msra.mxu3 %v2602_v52  ;;  %v2681_v52 = vld [vmem:[%s3997_s4 + $0x140] sm:$0xff]  ;;  %2097 = vset.pattern.permute.xlu0 %v4022_v62  ;;  %v2760_v62 = vld [vmem:[%s3996_s3 + $0x10] sm:$0xff] }
  0x3c   : > { %532 = vmatpush.msra.mxu0 %v2620_v55  ;;  %551 = vmatpush.msra.mxu1 %v2636_v58  ;;  %4092 = vst [vmem:[#allocation19_spill] sm:$0xff] %v2681_v52 }
  0x3d   : > { %640 = vmatpush.msra.mxu3 %v2626_v56  ;;  %533 = vmatmul.f32.vlgmr.msra.gmra.mxu0 %v2630_v57  ;;  %v2676_v56 = vld [vmem:[%s3996_s3 + $0x70] sm:$0xff]  ;;  %4100 = vst [vmem:[#allocation27_spill] sm:$0xff] %v2760_v62 }
  0x3e   : > { %645 = vmatpush.msrb.mxu0 %v2641_v59  ;;  %641 = vmatmul.f32.vlgmr.msra.gmra.mxu3 %v2644_v60  ;;  %4091 = vst [vmem:[#allocation18_spill] sm:$0xff] %v2676_v56 }
  0x3f   : > { %552 = vmatpush.msra.mxu1 %v2652_v61  ;;  %568 = vmatpush.msra.mxu2 %v2676_v56  ;;  %v2733_v56 = vld [vmem:[%s3997_s4 + $0x130] sm:$0xff] }
  0x40   : > { %646 = vmatpush.msrb.mxu0 %v2663_v63  ;;  %553 = vmatmul.f32.vlgmr.msra.gmra.mxu1 %v2630_v57  ;;  %v2747_v63 = vld [vmem:[%s3997_s4 + $0xf8] sm:$0xff] }
  0x41   : > { %665 = vmatpush.msrb.mxu1 %v2669_v0  ;;  %569 = vmatpush.msra.mxu2 %v2701_v36  ;;  %4099 = vst [vmem:[#allocation26_spill] sm:$0xff] %v2747_v63  ;;  %v2752_v36 = vld [vmem:[%s3997_s4 + $0x118] sm:$0xff] }
  0x42   : > { %647 = vmatpush.msrb.mxu0 %v2681_v52  ;;  %v2742_v52 = vld [vmem:[%s3996_s3 + $0x28] sm:$0xff]  ;;  %787 = vperm.xlu0 %2097, %v785_v24  }
  0x43   : > { %666 = vmatpush.msrb.mxu1 %v2687_v48  ;;  %4098 = vst [vmem:[#allocation25_spill] sm:$0xff] %v2742_v52  ;;  %v783_v48 = vstv %s461_s30  ;;  %570 = vmatpush.msra.mxu2 %v2722_v40  ;;  %v2780_v24 = vld [vmem:[%s3997_s4 + $0xc8] sm:$0xff] }
  0x44   : > { %648 = vmatpush.msrb.mxu0 %v2707_v32  ;;  %v2765_v32 = vld [vmem:[%s3997_s4 + $0xe0] sm:$0xff]  ;;  %vm784_vm1 = vcmp.lt.s32.totalorder %v783_v48, %v2693_v44  ;;  %880 = vmatpush.msrb.mxu3 %v2329_v6  ;;  %v2785_v40 = vld [vmem:[%s3997_s4 + $0xe8] sm:$0xff]  ;;  %v4102_v6 = vmov 0  }
  0x45   : > { %667 = vmatpush.msrb.mxu1 %v2713_v28  ;;  %4101 = vst [vmem:[#allocation28_spill] sm:$0xff] %v2765_v32  ;;  %v2770_v28 = vld [vmem:[%s3997_s4 + $0x100] sm:$0xff]  ;;  %571 = vmatpush.msra.mxu2 %v2742_v52  ;;  %v791_v48 = vsel %vm784_vm1, 1, %v4102_v6  ;;  %v2796_v52 = vld [vmem:[%s3997_s4 + $0xb0] sm:$0xff] }
  0x46   : > { %649 = vmatpush.msrb.mxu0 %v2728_v54  ;;  %881 = vmatpush.msrb.mxu3 %v2341_v8  ;;  %v1810_v8 = vstv %s1490_s17  ;;  %s1147_s17 = sadd.s32 1, %s2273_s21 }
  0x47   : > { %668 = vmatpush.msrb.mxu1 %v2733_v56  ;;  %572 = vmatpush.msra.mxu2 %v2760_v62  ;;  %v2810_v62 = vld [vmem:[%s3997_s4 + $0x98] sm:$0xff]  ;;  %vm1811_vm2 = vcmp.lt.s32.totalorder %v1810_v8, %v2693_v44  ;;  %v2858_v8 = vld [vmem:[%s3997_s4 + $0x70] sm:$0xff] }
  0x48   : > { %650 = vmatpush.msrb.mxu0 %v2747_v63  ;;  %v2801_v63 = vld [vmem:[%s3997_s4 + $0xd0] sm:$0xff]  ;;  %573 = vmatmul.f32.vlgmr.msra.gmra.mxu2 %v2630_v57  ;;  %v2828_v57 = vld [vmem:[%s3997_s4 + $0xa0] sm:$0xff] }
  0x49   : > { %669 = vmatpush.msrb.mxu1 %v2752_v36  ;;  %882 = vmatpush.msrb.mxu3 %v2359_v11  ;;  %v2823_v11 = vld [vmem:[%s3997_s4 + $0x80] sm:$0xff] }
  0x4a   : > { %651 = vmatpush.msrb.mxu0 %v2765_v32  ;;  %v2815_v32 = vld [vmem:[%s3997_s4 + $0xb8] sm:$0xff]  ;;  %793 = vperm.xlu0 %2097, %v791_v48   ;;  %v2843_v48 = vld [vmem:[%s3997_s4 + $0x88] sm:$0xff] }
  0x4b   : > { %670 = vmatpush.msrb.mxu1 %v2770_v28  ;;  %860 = vmatpush.msrb.mxu2 %v2302_v1  ;;  %v2838_v1 = vld [vmem:[%s3997_s4 + $0x68] sm:$0xff] }
  0x4c   : > { %652 = vmatpush.msrb.mxu0 %v2780_v24  ;;  %883 = vmatpush.msrb.mxu3 %v2377_v14  ;;  %v2853_v14 = vld [vmem:[%s3997_s4 + $0x50] sm:$0xff] }
  0x4d   : > { %671 = vmatpush.msrb.mxu1 %v2785_v40  ;;  %861 = vmatpush.msrb.mxu2 %v2307_v2  ;;  %v1814_v2 = vsel %vm1811_vm2, 1, %v4102_v6 }
  0x4e   : > { %653 = vmatpush.msrb.mxu0 %v2796_v52  ;;  %884 = vmatpush.msrb.mxu3 %v2395_v17  ;;  %v2872_v17 = vld [vmem:[%s3997_s4 + $0x58] sm:$0xff] }
  0x4f   : > { %672 = vmatpush.msrb.mxu1 %v2801_v63  ;;  %862 = vmatpush.msrb.mxu2 %v2324_v5  ;;  %v2867_v5 = vld [vmem:[%s3997_s4 + $0x38] sm:$0xff] }
  0x50   : > { %654 = vmatpush.msrb.mxu0 %v2810_v62  ;;  %885 = vmatpush.msrb.mxu3 %v2418_v21  ;;  %v2885_v21 = vld [vmem:[%s3997_s4 + $0x40] sm:$0xff] }
  0x51   : > { %673 = vmatpush.msrb.mxu1 %v2815_v32  ;;  %863 = vmatpush.msrb.mxu2 %v2346_v9  ;;  %v2880_v9 = vld [vmem:[%s3997_s4 + $0x20] sm:$0xff] }
  0x52   : > { %655 = vmatpush.msrb.mxu0 %v2823_v11  ;;  %1816 = vperm.xlu0 %2097, %v1814_v2   ;;  %v2899_v2 = vld [vmem:[%s3997_s4 + $0x28] sm:$0xff] }
  0x53   : > { %674 = vmatpush.msrb.mxu1 %v2828_v57  ;;  %864 = vmatpush.msrb.mxu2 %v2364_v12  ;;  %v2894_v12 = vld [vmem:[%s3997_s4 + $0x8] sm:$0xff] }
  0x54   : > { %656 = vmatpush.msrb.mxu0 %v2838_v1  ;;  %886 = vmatpush.msrb.mxu3 %v2442_v25  ;;  %v4114_v25 = vld [vmem:[#allocation21_spill] sm:$0xff] }
  0x55   : > { %675 = vmatpush.msrb.mxu1 %v2843_v48  ;;  %865 = vmatpush.msrb.mxu2 %v2382_v15  ;;  %v2908_v15 = vld [vmem:[%s3997_s4 + $0x10] sm:$0xff] }
  0x56   : > { %657 = vmatpush.msrb.mxu0 %v2853_v14  ;;  %887 = vmatpush.msrb.mxu3 %v2466_v29  ;;  %v4117_v29 = vld [vmem:[#allocation24_spill] sm:$0xff] }
  0x57   : > { %676 = vmatpush.msrb.mxu1 %v2858_v8  ;;  %866 = vmatpush.msrb.mxu2 %v2400_v18  ;;  %v4109_v18 = vld [vmem:[#allocation16_spill] sm:$0xff] }
  0x58   : > { %658 = vmatpush.msrb.mxu0 %v2867_v5  ;;  %888 = vmatpush.msrb.mxu3 %v2490_v33  ;;  %v4120_v33 = vld [vmem:[#allocation25_spill] sm:$0xff] }
  0x59   : > { %677 = vmatpush.msrb.mxu1 %v2872_v17  ;;  %867 = vmatpush.msrb.mxu2 %v2428_v23  ;;  %v4113_v23 = vld [vmem:[#allocation7_spill] sm:$0xff] }
  0x5a   : > { %659 = vmatpush.msrb.mxu0 %v2880_v9  ;;  %889 = vmatpush.msrb.mxu3 %v2514_v37  ;;  %v4125_v37 = vld [vmem:[#allocation14_spill] sm:$0xff] }
  0x5b   : > { %678 = vmatpush.msrb.mxu1 %v2885_v21  ;;  %868 = vmatpush.msrb.mxu2 %v2452_v27  ;;  %v4116_v27 = vld [vmem:[#allocation26_spill] sm:$0xff] }
  0x5c   : > { %660 = vmatpush.msrb.mxu0 %v2894_v12  ;;  %890 = vmatpush.msrb.mxu3 %v2538_v41  ;;  %v463_v41 = vld [vmem:[%s2286_s13 + $0x8] sm:$0xff] }
  0x5d   : > { %679 = vmatpush.msrb.mxu1 %v2899_v2  ;;  %661 = vmatmul.f32.vlgmr.msrb.gmra.mxu0 %v2644_v60 }
  0x5e   : > { %900 = vmatpush.msra.mxu0 %v2411_v20  ;;  %869 = vmatpush.msrb.mxu2 %v2476_v31  ;;  %v4110_v20 = vld [vmem:[#allocation6_spill] sm:$0xff]  ;;  %v4119_v31 = vld [vmem:[#allocation28_spill] sm:$0xff] }
  0x5f   : > { %680 = vmatpush.msrb.mxu1 %v2908_v15  ;;  %891 = vmatpush.msrb.mxu3 %v2562_v45 }
  0x60   : > { %681 = vmatmul.f32.vlgmr.msrb.gmra.mxu1 %v2644_v60  ;;  %901 = vmatpush.msra.mxu0 %v2423_v22  ;;  %v4111_v22 = vld [vmem:[#allocation22_spill] sm:$0xff] }
  0x61   : > { %870 = vmatpush.msrb.mxu2 %v2500_v35  ;;  %968 = vmatpush.msra.mxu1 %v2312_v3  ;;  %v4103_v3 = vld [vmem:[#allocation17_spill] sm:$0xff]  ;;  %v4122_v35 = vld [vmem:[#allocation27_spill] sm:$0xff] }
  0x62   : > { %902 = vmatpush.msra.mxu0 %v2447_v26  ;;  %892 = vmatpush.msrb.mxu3 %v2586_v49  ;;  %v4115_v26 = vld [vmem:[#allocation8_spill] sm:$0xff] }
  0x63   : > { %871 = vmatpush.msrb.mxu2 %v2524_v39  ;;  %969 = vmatpush.msra.mxu1 %v2319_v4  ;;  %v4104_v4 = vld [vmem:[#allocation20_spill] sm:$0xff] }
  0x64   : > { %903 = vmatpush.msra.mxu0 %v2471_v30  ;;  %893 = vmatpush.msrb.mxu3 %v2610_v53  ;;  %v4118_v30 = vld [vmem:[#allocation9_spill] sm:$0xff] }
  0x65   : > { %872 = vmatpush.msrb.mxu2 %v2548_v43  ;;  %970 = vmatpush.msra.mxu1 %v2334_v7  ;;  %v4105_v7 = vld [vmem:[#allocation13_spill] sm:$0xff] }
  0x66   : > { %904 = vmatpush.msra.mxu0 %v2495_v34  ;;  %894 = vmatpush.msrb.mxu3 %v2636_v58  ;;  %v4121_v34 = vld [vmem:[#allocation10_spill] sm:$0xff] }
  0x67   : > { %873 = vmatpush.msrb.mxu2 %v2572_v47  ;;  %971 = vmatpush.msra.mxu1 %v2352_v10  ;;  %v4106_v10 = vld [vmem:[#allocation5_spill] sm:$0xff] }
  0x68   : > { %905 = vmatpush.msra.mxu0 %v2519_v38  ;;  %895 = vmatpush.msrb.mxu3 %v2652_v61 }
  0x69   : > { %874 = vmatpush.msrb.mxu2 %v2596_v51  ;;  %972 = vmatpush.msra.mxu1 %v2370_v13  ;;  %v4107_v13 = vld [vmem:[#allocation19_spill] sm:$0xff] }
  0x6a   : > { %906 = vmatpush.msra.mxu0 %v2543_v42  ;;  %1008 = vmatpush.msra.mxu3 %v2669_v0 }
  0x6b   : > { %875 = vmatpush.msrb.mxu2 %v2620_v55  ;;  %973 = vmatpush.msra.mxu1 %v2388_v16  ;;  %v4108_v16 = vld [vmem:[#allocation23_spill] sm:$0xff] }
  0x6c   : > { %907 = vmatpush.msra.mxu0 %v2567_v46  ;;  %1009 = vmatpush.msra.mxu3 %v4104_v4  ;;  %v2042_v46 = vld [vmem:[%s2291_s20 + $0x48] sm:$0xff]  ;;  %v464_v4 = vld [vmem:[%s2286_s13 + $0x10] sm:$0xff] }
  0x6d   : > { %988 = vmatpush.msra.mxu2 %v2641_v59  ;;  %974 = vmatpush.msra.mxu1 %v2406_v19  ;;  %v4112_v19 = vld [vmem:[#allocation18_spill] sm:$0xff] }
  0x6e   : > { %908 = vmatpush.msra.mxu0 %v2591_v50  ;;  %1010 = vmatpush.msra.mxu3 %v4108_v16 }
  0x6f   : > { %989 = vmatpush.msra.mxu2 %v4103_v3  ;;  %975 = vmatpush.msra.mxu1 %v4106_v10  ;;  %v2043_v10 = vld [vmem:[%s2291_s20 + $0x50] sm:$0xff] }
  0x70   : > { %909 = vmatpush.msra.mxu0 %v4105_v7  ;;  %1011 = vmatpush.msra.mxu3 %v2733_v56 }
  0x71   : > { %990 = vmatpush.msra.mxu2 %v4107_v13  ;;  %976 = vmatpush.msra.mxu1 %v4110_v20 }
  0x72   : > { %910 = vmatpush.msra.mxu0 %v4109_v18  ;;  %1012 = vmatpush.msra.mxu3 %v2752_v36  ;;  %v4123_v36 = vld [vmem:[#allocation11_spill] sm:$0xff] }
  0x73   : > { %991 = vmatpush.msra.mxu2 %v4111_v22  ;;  %977 = vmatpush.msra.mxu1 %v4113_v23 }
  0x74   : > { %911 = vmatpush.msra.mxu0 %v4112_v19  ;;  %1013 = vmatpush.msra.mxu3 %v2770_v28  ;;  %v4124_v28 = vld [vmem:[#allocation12_spill] sm:$0xff] }
  0x75   : > { %992 = vmatpush.msra.mxu2 %v2728_v54  ;;  %978 = vmatpush.msra.mxu1 %v4115_v26 }
  0x76   : > { %912 = vmatpush.msra.mxu0 %v4114_v25  ;;  %1014 = vmatpush.msra.mxu3 %v2785_v40 }
  0x77   : > { %993 = vmatpush.msra.mxu2 %v4116_v27  ;;  %979 = vmatpush.msra.mxu1 %v4118_v30 }
  0x78   : > { %913 = vmatpush.msra.mxu0 %v4117_v29  ;;  %1015 = vmatpush.msra.mxu3 %v2801_v63  ;;  %v3007_v63 = vld [vmem:[%s3998_s5] ss:$0 sm:$0xff] }
  0x79   : > { %994 = vmatpush.msra.mxu2 %v4119_v31  ;;  %980 = vmatpush.msra.mxu1 %v4121_v34  ;;  %v1124_v34 = vstv %s802_s26 }
  0x7a   : > { %914 = vmatpush.msra.mxu0 %v4120_v33  ;;  %1016 = vmatpush.msra.mxu3 %v2815_v32  ;;  %v462_v32 = vld [vmem:[%s2286_s13] sm:$0xff]  ;;  %vm1125_vm13 = vcmp.lt.s32.totalorder %v1124_v34, %v2693_v44  ;;  %v3165_v34 = vld [vmem:[%s3996_s3 + $0xa8] sm:$0xff] }
  0x7b   : > { %995 = vmatpush.msra.mxu2 %v2780_v24  ;;  %981 = vmatpush.msra.mxu1 %v4123_v36  ;;  %v4128_v36 = vld [vmem:[#allocation15_spill] sm:$0xff] }
  0x7c   : > { %915 = vmatpush.msra.mxu0 %v4122_v35  ;;  %2098 = vset.pattern.permute.xlu1 %v4102_v6 }
  0x7d   : > { %996 = vmatpush.msra.mxu2 %v2796_v52  ;;  %982 = vmatpush.msra.mxu1 %v4124_v28 }
  0x7e   : > { %1017 = vmatpush.msra.mxu3 %v2828_v57  ;;  %2099 = vset.pattern.permute.xlu2 %v4102_v6 }
  0x7f   : > { %997 = vmatpush.msra.mxu2 %v2810_v62  ;;  %983 = vmatpush.msra.mxu1 %v4125_v37 }
  0x80   : > { %1018 = vmatpush.msra.mxu3 %v2843_v48 }
  0x81   : > { %998 = vmatpush.msra.mxu2 %v2823_v11 }
  0x82   : > { %1019 = vmatpush.msra.mxu3 %v2858_v8 }
  0x83   : > { %999 = vmatpush.msra.mxu2 %v2838_v1 }
  0x84   : > { %1020 = vmatpush.msra.mxu3 %v2872_v17 }
  0x85   : > { %1000 = vmatpush.msra.mxu2 %v2853_v14 }
  0x86   : > { %1021 = vmatpush.msra.mxu3 %v2885_v21 }
  0x87   : > { %1001 = vmatpush.msra.mxu2 %v2867_v5 }
  0x88   : > { %1022 = vmatpush.msra.mxu3 %v2899_v2 }
  0x89   : > { %1002 = vmatpush.msra.mxu2 %v2880_v9 }
  0x8a   : > { %1023 = vmatpush.msra.mxu3 %v2908_v15 }
  0x8b   : > { %1003 = vmatpush.msra.mxu2 %v2894_v12 }
  0xba   : > { %v534_v38 = vpop.f32.mrf.mxu0 }
  0xbb   : > { %v685_v39 = vadd.f32 %v534_v38, %v462_v32  ;;  %v1128_v38 = vsel %vm1125_vm13, 1, %v4102_v6  ;;  %v3195_v32 = vld [vmem:[%s3996_s3 + $0x148] sm:$0xff] }
  0xbc   : > { %1130 = vperm.xlu1 %2098, %v1128_v38   ;;  %v3201_v38 = vld [vmem:[%s3996_s3 + $0x78] sm:$0xff] }
  0xbd   : > { %v2045_v42 = vmul.f32 -1.442695, %v685_v39  ;;  %v554_v43 = vpop.f32.mrf.mxu1  ;;  %v1126_v39 = vstv %s803_s11  ;;  %s1146_s11 = sadd.s32 2, %s2269_s19 }
  0xbe   : > { %v725_v45 = vadd.f32 %v554_v43, %v463_v41  ;;  %v3034_v41 = vld [vmem:[%s3999_s6] ss:$0 sm:$0xff]  ;;  %v788_v43 = vpop.permute.xlu0 %787  ;;  %vm1127_vm1 = vcmp.lt.s32.totalorder %v1126_v39, %v2693_v44 }
  0xbf   : > { %2102 = vpow2.f32 %v2045_v42  ;;  %vm789_vm0 = vcmp.eq.s32.totalorder %v788_v43, 1  ;;  %v3206_v39 = vld [vmem:[%s3996_s3 + $0x80] sm:$0xff] }
  0xc0   : > { %v2047_v47 = vmul.f32 -1.442695, %v725_v45  ;;  %v3219_v43 = vld [vmem:[%s3996_s3 + $0x60] sm:$0xff] }
  0xc1   : > { %v642_v49 = vpop.f32.mrf.mxu3 }
  0xc2   : > { %v705_v50 = vadd.f32 %v2042_v46, %v642_v49  ;;  %2104 = vpow2.f32 %v2047_v47 }
  0xc4   : > { %v2046_v51 = vmul.f32 -1.442695, %v705_v50 }
  0xc5   : > { %v2103_v52 = vpop.eup %2102 }
  0xc6   : > { %v689_v53 = vadd.f32 1.0, %v2103_v52  ;;  %2106 = vpow2.f32 %v2046_v51 }
  0xc8   : > { %2108 = vrcp.f32 %v689_v53  ;;  %v2105_v54 = vpop.eup %2104  ;;  %v699_v61 = vand.u32 2147483647, %v689_v53  ;;  %v701_v62 = vand.u32 2147483648, %v689_v53  ;;  %vm695_vm3 = vweird.f32 %v689_v53 }
  0xc9   : > { %v729_v55 = vadd.f32 1.0, %v2105_v54 }
  0xca   : > { %vm700_vm6 = vcmp.eq.f32.partialorder %v699_v61, 8.507059e+37  ;;  %v702_v14 = vor.u32 1.1754944e-38, %v701_v62 }
  0xcb   : > { %2110 = vrcp.f32 %v729_v55  ;;  %v574_v24 = vpop.f32.mrf.mxu2  ;;  %vm735_vm7 = vweird.f32 %v729_v55  ;;  %v741_v8 = vand.u32 2147483648, %v729_v55  ;;  %v739_v2 = vand.u32 2147483647, %v729_v55 }
  0xcc   : > { %v2107_v56 = vpop.eup %2106  ;;  %v765_v21 = vadd.f32 %v3007_v63, %v574_v24 }
  0xcd   : > { %v3001_v57 = vadd.f32 1.0, %v2107_v56  ;;  %v742_v18 = vor.u32 1.1754944e-38, %v741_v8  ;;  %vm740_vm10 = vcmp.eq.f32.partialorder %v739_v2, 8.507059e+37  ;;  %v1134_v56 = vsel %vm1127_vm1, 1, %v4102_v6 }
  0xce   : > { %v2109_v58 = vpop.eup %2108  ;;  %1136 = vperm.xlu1 %2098, %v1134_v56   ;;  %v2051_v56 = vld [vmem:[%s2286_s13 + $0x20] sm:$0xff] }
  0xcf   : > { %2112 = vrcp.f32 %v3001_v57  ;;  %v691_v59 = vmul.f32 %v2109_v58, %v689_v53  ;;  %vm696_vm4 = vweird.f32 %v2109_v58  ;;  %vm715_vm11 = vweird.f32 %v3001_v57 }
  0xd0   : > { %vm3009_vm5 = vmor %vm695_vm3, %vm696_vm4  ;;  %v719_v31 = vand.u32 2147483647, %v3001_v57  ;;  %v721_v33 = vand.u32 2147483648, %v3001_v57 }
  0xd1   : > { %v692_v0 = vsub.f32 1.0, %v691_v59  ;;  %v2111_v40 = vpop.eup %2110  ;;  %v2044_v59 = vld [vmem:[%s2291_s20 + $0x58] sm:$0xff] }
  0xd2   : > { %v731_v11 = vmul.f32 %v2111_v40, %v729_v55  ;;  %vm736_vm8 = vweird.f32 %v2111_v40  ;;  %vm720_vm15 = vcmp.eq.f32.partialorder %v719_v31, 8.507059e+37  ;;  %v722_v47 = vor.u32 1.1754944e-38, %v721_v33  ;;  %v3152_v31 = vld [vmem:[%s3996_s3 + $0xc8] sm:$0xff]  ;;  %v3159_v33 = vld [vmem:[%s3996_s3 + $0x178] sm:$0xff] }
  0xd3   : > { %v693_v1 = vmul.f32 %v2109_v58, %v692_v0  ;;  %vm737_vm9 = vmor %vm735_vm7, %vm736_vm8 }
  0xd4   : > { %v732_v17 = vsub.f32 1.0, %v731_v11 }
  0xd5   : > { %v2113_v5 = vpop.eup %2112  ;;  %v694_v9 = vadd.f32 %v2109_v58, %v693_v1 }
  0xd6   : > { %v711_v12 = vmul.f32 %v2113_v5, %v3001_v57  ;;  %v733_v3 = vmul.f32 %v2111_v40, %v732_v17  ;;  %vm716_vm12 = vweird.f32 %v2113_v5  ;;  %v1812_v57 = vstv %s2273_s21 }
  0xd7   : > { %v698_v15 = vsel %vm3009_vm5, %v2109_v58, %v694_v9  ;;  %vm3026_vm14 = vmor %vm715_vm11, %vm716_vm12  ;;  %vm1813_vm2 = vcmp.lt.s32.totalorder %v1812_v57, %v2693_v44  ;;  %v3275_v57 = vld [vmem:[%s3996_s3 + $0x18] sm:$0xff] }
  0xd8   : > { %v703_v7 = vsel %vm700_vm6, %v702_v14, %v698_v15  ;;  %v734_v16 = vadd.f32 %v2111_v40, %v733_v3  ;;  %v712_v22 = vsub.f32 1.0, %v711_v12  ;;  %v1820_v24 = vsel %vm1813_vm2, 1, %v4102_v6  ;;  %v794_v15 = vpop.permute.xlu0 %793 }
  0xd9   : > { %v766_v13 = vmul.f32 %v765_v21, %v703_v7  ;;  %1822 = vperm.xlu1 %2098, %v1820_v24   ;;  %vm795_vm7 = vcmp.eq.s32.totalorder %v794_v15, 1  ;;  %v3063_v7 = vld [vmem:[%s3996_s3 + $0x168] sm:$0xff]  ;;  %v3358_v15 = vld [vmem:[%s3997_s4 + $0x138] sm:$0xff] }
  0xda   : > { %v662_v20 = vpop.f32.mrf.mxu0  ;;  %v738_v25 = vsel %vm737_vm9, %v2111_v40, %v734_v16  ;;  %v713_v29 = vmul.f32 %v2113_v5, %v712_v22  ;;  %1204 = vmatpush.msrb.mxu0 %v3063_v7  ;;  %v3087_v16 = vld [vmem:[%s3996_s3 + $0x138] sm:$0xff]  ;;  %v3104_v22 = vld [vmem:[%s3996_s3 + $0x128] sm:$0xff] }
  0xdb   : > { %v767_v19 = vadd.f32 %v766_v13, %v464_v4  ;;  %v745_v23 = vadd.f32 %v2043_v10, %v662_v20  ;;  %v743_v27 = vsel %vm740_vm10, %v742_v18, %v738_v25  ;;  %v3068_v10 = vld [vmem:[%s3996_s3 + $0x170] sm:$0xff]  ;;  %v3080_v13 = vld [vmem:[%s3996_s3 + $0x158] sm:$0xff]  ;;  %v3092_v18 = vld [vmem:[%s3996_s3 + $0x140] sm:$0xff] }
  0xdc   : > { %v773_v30 = vsub.f32 1.0, %v743_v27  ;;  %v714_v35 = vadd.f32 %v2113_v5, %v713_v29  ;;  %v775_v28 = vmul.f32 %v743_v27, %v4128_v36  ;;  %1224 = vmatpush.msrb.mxu1 %v3068_v10  ;;  %v3099_v20 = vld [vmem:[%s3996_s3 + $0x120] sm:$0xff]  ;;  %v3123_v25 = vld [vmem:[%s3996_s3 + $0xf0] sm:$0xff]  ;;  %v3135_v27 = vld [vmem:[%s3996_s3 + $0xd8] sm:$0xff] }
  0xdd   : > { %2114 = vtanh.f32 %v767_v19  ;;  %v2048_v26 = vmul.f32 -1.442695, %v745_v23  ;;  %v682_v46 = vpop.f32.mrf.mxu1  ;;  %v3111_v19 = vld [vmem:[%s3996_s3 + $0x108] sm:$0xff]  ;;  %v3116_v23 = vld [vmem:[%s3996_s3 + $0x110] sm:$0xff]  ;;  %v3140_v29 = vld [vmem:[%s3996_s3 + $0xe0] sm:$0xff] }
  0xde   : > { %v718_v50 = vsel %vm3026_vm14, %v2113_v5, %v714_v35  ;;  %v769_v52 = vadd.f32 %v3034_v41, %v682_v46  ;;  %1225 = vmatpush.msrb.mxu1 %v3080_v13  ;;  %v3170_v35 = vld [vmem:[%s3996_s3 + $0xb0] sm:$0xff]  ;;  %v3231_v46 = vld [vmem:[%s3996_s3 + $0x118] sm:$0xff] }
  0xdf   : > { %2116 = vpow2.f32 %v2048_v26  ;;  %v723_v55 = vsel %vm720_vm15, %v722_v47, %v718_v50  ;;  %v3128_v26 = vld [vmem:[%s3996_s3 + $0xf8] sm:$0xff]  ;;  %v3237_v47 = vld [vmem:[%s3996_s3 + $0x48] sm:$0xff]  ;;  %v3249_v50 = vld [vmem:[%s3996_s3 + $0x100] sm:$0xff] }
  0xe0   : > { %v770_v58 = vmul.f32 %v769_v52, %v723_v55  ;;  %1226 = vmatpush.msrb.mxu1 %v3092_v18  ;;  %v3260_v52 = vld [vmem:[%s3996_s3 + $0x38] sm:$0xff]  ;;  %v3268_v55 = vld [vmem:[%s3996_s3 + $0xe8] sm:$0xff] }
  0xe1   : > { %4131 = vst [vmem:[#allocation17_spill] sm:$0xff] %v3260_v52 }
  0xe2   : > { %v771_v0 = vadd.f32 %v2044_v59, %v770_v58  ;;  %1227 = vmatpush.msrb.mxu1 %v3104_v22  ;;  %v3280_v58 = vld [vmem:[%s3996_s3 + $0x20] sm:$0xff]  ;;  %v3287_v59 = vld [vmem:[%s3996_s3 + $0xd0] sm:$0xff] }
  0xe3   : > { %v2115_v37 = vpop.eup %2114  ;;  %4132 = vst [vmem:[#allocation20_spill] sm:$0xff] %v3280_v58 }
  0xe4   : > { %v774_v42 = vmul.f32 %v2115_v37, %v773_v30  ;;  %1228 = vmatpush.msrb.mxu1 %v3116_v23  ;;  %v3147_v30 = vld [vmem:[%s3996_s3 + $0xc0] sm:$0xff]  ;;  %v3188_v37 = vld [vmem:[%s3996_s3 + $0x98] sm:$0xff]  ;;  %4133 = vst [vmem:[#allocation13_spill] sm:$0xff] %v3287_v59 }
  0xe5   : > { %v2117_v45 = vpop.eup %2116 }
  0xe6   : > { %v749_v49 = vadd.f32 1.0, %v2117_v45  ;;  %v776_v51 = vadd.f32 %v775_v28, %v774_v42  ;;  %1229 = vmatpush.msrb.mxu1 %v3128_v26  ;;  %v3183_v28 = vld [vmem:[%s3996_s3 + $0x90] sm:$0xff]  ;;  %v3224_v45 = vld [vmem:[%s3996_s3 + $0x68] sm:$0xff] }
  0xe7   : > { %v3213_v42 = vld [vmem:[%s3996_s3 + $0x130] sm:$0xff] }
  0xe8   : > { %2118 = vrcp.f32 %v749_v49  ;;  %v3041_v53 = vsel %vm789_vm0, %v776_v51, %v4128_v36  ;;  %v797_v54 = vsel %vm789_vm0, %v776_v51, 0.0  ;;  %v761_v11 = vand.u32 2147483648, %v749_v49  ;;  %1230 = vmatpush.msrb.mxu1 %v3140_v29  ;;  %v3177_v36 = vld [vmem:[%s3996_s3 + $0x160] sm:$0xff]  ;;  %v3255_v51 = vld [vmem:[%s3996_s3 + $0x30] sm:$0xff] }
  0xe9   : > { %798 = vst [vmem:[%s2281_s29] sm:$0xff] %v797_v54  ;;  %876 = vmatmul.f32.vlgmr.msrb.gmra.mxu2 %v3041_v53  ;;  %896 = vmatmul.f32.vlgmr.msrb.gmra.mxu3 %v3041_v53  ;;  %v759_v48 = vand.u32 2147483647, %v749_v49  ;;  %2120 = vtanh.f32 %v771_v0  ;;  %vm755_vm4 = vweird.f32 %v749_v49  ;;  %v2050_v54 = vld [vmem:[%s2286_s13 + $0x18] sm:$0xff]  ;;  %v3293_v0 = vld [vmem:[%s3996_s3] sm:$0xff] }
  0xea   : > { %916 = vmatmul.f32.vlgmr.msra.gmra.mxu0 %v3041_v53  ;;  %v762_v8 = vor.u32 1.1754944e-38, %v761_v11  ;;  %1231 = vmatpush.msrb.mxu1 %v3152_v31 }
  0xeb   : > { %vm760_vm6 = vcmp.eq.f32.partialorder %v759_v48, 8.507059e+37  ;;  %1244 = vmatpush.msrb.mxu2 %v3159_v33  ;;  %v3310_v48 = vld [vmem:[%s3997_s4 + $0x168] sm:$0xff] }
  0xec   : > { %1232 = vmatpush.msrb.mxu1 %v3170_v35  ;;  %1312 = vmatpush.msrb.mxu3 %v3310_v48 }
  0xed   : > { %1245 = vmatpush.msrb.mxu2 %v3177_v36 }
  0xee   : > { %v2119_v61 = vpop.eup %2118  ;;  %1233 = vmatpush.msrb.mxu1 %v3188_v37 }
  0xef   : > { %v751_v62 = vmul.f32 %v2119_v61, %v749_v49  ;;  %vm756_vm3 = vweird.f32 %v2119_v61  ;;  %v2121_v9 = vpop.eup %2120  ;;  %1246 = vmatpush.msrb.mxu2 %v3195_v32  ;;  %v3242_v49 = vld [vmem:[%s3996_s3 + $0x50] sm:$0xff] }
  0xf0   : > { %vm757_vm5 = vmor %vm755_vm4, %vm756_vm3  ;;  %1234 = vmatpush.msrb.mxu1 %v3206_v39 }
  0xf1   : > { %v752_v40 = vsub.f32 1.0, %v751_v62  ;;  %1247 = vmatpush.msrb.mxu2 %v3213_v42 }
  0xf2   : > { %1235 = vmatpush.msrb.mxu1 %v3224_v45 }
  0xf3   : > { %v753_v1 = vmul.f32 %v2119_v61, %v752_v40  ;;  %1248 = vmatpush.msrb.mxu2 %v3231_v46  ;;  %v3298_v40 = vld [vmem:[%s3996_s3 + $0x8] sm:$0xff] }
  0xf4   : > { %1236 = vmatpush.msrb.mxu1 %v3242_v49  ;;  %4134 = vst [vmem:[#allocation5_spill] sm:$0xff] %v3298_v40 }
  0xf5   : > { %v754_v14 = vadd.f32 %v2119_v61, %v753_v1  ;;  %1249 = vmatpush.msrb.mxu2 %v3249_v50  ;;  %v3305_v1 = vld [vmem:[%s3996_s3 + $0xb8] sm:$0xff] }
  0xf6   : > { %1237 = vmatpush.msrb.mxu1 %v3260_v52  ;;  %4135 = vst [vmem:[#allocation19_spill] sm:$0xff] %v3305_v1  ;;  %v3570_v52 = vld [vmem:[%s3997_s4 + $0x60] sm:$0xff] }
  0xf7   : > { %v758_v5 = vsel %vm757_vm5, %v2119_v61, %v754_v14  ;;  %1250 = vmatpush.msrb.mxu2 %v3268_v55  ;;  %v3315_v14 = vld [vmem:[%s3997_s4 + $0x170] sm:$0xff]  ;;  %4166 = vst [vmem:[#allocation40_spill] sm:$0xff] %v3570_v52 }
  0xf8   : > { %v763_v17 = vsel %vm760_vm6, %v762_v8, %v758_v5  ;;  %1238 = vmatpush.msrb.mxu1 %v3280_v58  ;;  %v3322_v8 = vld [vmem:[%s3997_s4 + $0x178] sm:$0xff]  ;;  %v3480_v58 = vld [vmem:[%s3996_s3 + $0x10] sm:$0xff] }
  0xf9   : > { %v777_v44 = vsub.f32 1.0, %v763_v17  ;;  %v779_v12 = vmul.f32 %v763_v17, %v2644_v60  ;;  %1251 = vmatpush.msrb.mxu2 %v3287_v59  ;;  %4136 = vst [vmem:[#allocation23_spill] sm:$0xff] %v3322_v8 }
  0xfa   : > { %1239 = vmatpush.msrb.mxu1 %v3298_v40  ;;  %4153 = vst [vmem:[#allocation14_spill] sm:$0xff] %v3480_v58 }
  0xfb   : > { %v778_v21 = vmul.f32 %v2121_v9, %v777_v44  ;;  %1252 = vmatpush.msrb.mxu2 %v3305_v1  ;;  %v3329_v44 = vld [vmem:[%s3996_s3 + $0xa0] sm:$0xff]  ;;  %v3334_v9 = vld [vmem:[%s3997_s4 + $0x150] sm:$0xff]  ;;  %v3490_v1 = vld [vmem:[%s3997_s4 + $0xc8] sm:$0xff] }
  0xfc   : > { %4137 = vst [vmem:[#allocation16_spill] sm:$0xff] %v3329_v44  ;;  %1313 = vmatpush.msrb.mxu3 %v3334_v9 }
  0xfd   : > { %v780_v2 = vadd.f32 %v779_v12, %v778_v21  ;;  %1253 = vmatpush.msrb.mxu2 %v3329_v44  ;;  %v3341_v21 = vld [vmem:[%s3997_s4 + $0x158] sm:$0xff]  ;;  %v3346_v12 = vld [vmem:[%s3997_s4 + $0x160] sm:$0xff]  ;;  %4155 = vst [vmem:[#allocation29_spill] sm:$0xff] %v3490_v1 }
  0xfe   : > { %4138 = vst [vmem:[#allocation6_spill] sm:$0xff] %v3346_v12  ;;  %1314 = vmatpush.msrb.mxu3 %v3358_v15  ;;  %v3463_v44 = vld [vmem:[%s3997_s4 + $0xe0] sm:$0xff] }
  0xff   : > { %v3054_v3 = vsel %vm795_vm7, %v780_v2, %v2644_v60  ;;  %v799_v4 = vsel %vm795_vm7, %v780_v2, 0.0  ;;  %v3075_v60 = vld [vmem:[%s3996_s3 + $0x150] sm:$0xff]  ;;  %v3353_v2 = vld [vmem:[%s3996_s3 + $0x88] sm:$0xff]  ;;  %4151 = vst [vmem:[#allocation11_spill] sm:$0xff] %v3463_v44 }
 0x100   : > { %2049 = vst [vmem:[%s2296_s22 + $0x18] sm:$0xff] %v799_v4  ;;  %984 = vmatmul.f32.vlgmr.msra.gmra.mxu1 %v3054_v3  ;;  %1004 = vmatmul.f32.vlgmr.msra.gmra.mxu2 %v3054_v3  ;;  %v3363_v4 = vld [vmem:[%s3997_s4 + $0x140] sm:$0xff] }
 0x101   : > { %1024 = vmatmul.f32.vlgmr.msra.gmra.mxu3 %v3054_v3  ;;  %1205 = vmatpush.msrb.mxu0 %v3075_v60  ;;  %4139 = vst [vmem:[#allocation22_spill] sm:$0xff] %v3353_v2 }
 0x102   : > { %1352 = vmatpush.msra.mxu1 %v3322_v8  ;;  %1254 = vmatpush.msrb.mxu2 %v3353_v2 }
 0x103   : > { %1206 = vmatpush.msrb.mxu0 %v3087_v16 }
 0x104   : > { %1353 = vmatpush.msra.mxu1 %v3346_v12  ;;  %v3425_v12 = vld [vmem:[%s3996_s3 + $0x40] sm:$0xff] }
 0x105   : > { %1207 = vmatpush.msrb.mxu0 %v3099_v20  ;;  %4145 = vst [vmem:[#allocation24_spill] sm:$0xff] %v3425_v12 }
 0x107   : > { %1208 = vmatpush.msrb.mxu0 %v3111_v19 }
 0x109   : > { %1209 = vmatpush.msrb.mxu0 %v3123_v25 }
 0x10b   : > { %1210 = vmatpush.msrb.mxu0 %v3135_v27 }
 0x10d   : > { %1211 = vmatpush.msrb.mxu0 %v3147_v30 }
 0x10f   : > { %1212 = vmatpush.msrb.mxu0 %v3165_v34 }
 0x111   : > { %1213 = vmatpush.msrb.mxu0 %v3183_v28 }
 0x113   : > { %1214 = vmatpush.msrb.mxu0 %v3201_v38 }
 0x115   : > { %1215 = vmatpush.msrb.mxu0 %v3219_v43 }
 0x117   : > { %1216 = vmatpush.msrb.mxu0 %v3237_v47 }
 0x119   : > { %1217 = vmatpush.msrb.mxu0 %v3255_v51 }
 0x11b   : > { %1218 = vmatpush.msrb.mxu0 %v3275_v57 }
 0x11d   : > { %1219 = vmatpush.msrb.mxu0 %v3293_v0 }
 0x11f   : > { %1332 = vmatpush.msra.mxu0 %v3315_v14 }
 0x121   : > { %1333 = vmatpush.msra.mxu0 %v3341_v21 }
 0x123   : > { %1334 = vmatpush.msra.mxu0 %v3363_v4 }
 0x16c   : > { %v877_v61 = vpop.f32.mrf.mxu2  ;;  %v897_v62 = vpop.f32.mrf.mxu3 }
 0x16d   : > { %v1028_v24 = vadd.f32 %v2050_v54, %v877_v61  ;;  %v1068_v11 = vadd.f32 %v2051_v56, %v897_v62  ;;  %v3370_v54 = vld [vmem:[%s3997_s4 + $0x148] sm:$0xff]  ;;  %v3377_v56 = vld [vmem:[%s3996_s3 + $0x70] sm:$0xff]  ;;  %v3382_v61 = vld [vmem:[%s3997_s4 + $0x120] sm:$0xff] }
 0x16e   : > { %4140 = vst [vmem:[#allocation18_spill] sm:$0xff] %v3370_v54  ;;  %1354 = vmatpush.msra.mxu1 %v3370_v54  ;;  %v3387_v62 = vld [vmem:[%s3997_s4 + $0x128] sm:$0xff]  ;;  %1255 = vmatpush.msrb.mxu2 %v3377_v56 }
 0x16f   : > { %v2056_v5 = vmul.f32 -1.442695, %v1028_v24  ;;  %v2058_v17 = vmul.f32 -1.442695, %v1068_v11  ;;  %4141 = vst [vmem:[#allocation7_spill] sm:$0xff] %v3377_v56  ;;  %1315 = vmatpush.msrb.mxu3 %v3382_v61  ;;  %v3394_v24 = vld [vmem:[%s3997_s4 + $0x130] sm:$0xff]  ;;  %1335 = vmatpush.msra.mxu0 %v3387_v62 }
 0x170   : > { %4142 = vst [vmem:[#allocation21_spill] sm:$0xff] %v3394_v24  ;;  %1355 = vmatpush.msra.mxu1 %v3394_v24  ;;  %v3401_v11 = vld [vmem:[%s3996_s3 + $0x58] sm:$0xff] }
 0x171   : > { %2122 = vpow2.f32 %v2056_v5  ;;  %4143 = vst [vmem:[#allocation8_spill] sm:$0xff] %v3401_v11  ;;  %v3406_v5 = vld [vmem:[%s3997_s4 + $0x108] sm:$0xff]  ;;  %1256 = vmatpush.msrb.mxu2 %v3401_v11  ;;  %v3418_v24 = vld [vmem:[%s3997_s4 + $0x118] sm:$0xff]  ;;  %v3430_v11 = vld [vmem:[%s3997_s4 + $0xf0] sm:$0xff] }
 0x172   : > { %2124 = vpow2.f32 %v2058_v17  ;;  %v3411_v17 = vld [vmem:[%s3997_s4 + $0x110] sm:$0xff]  ;;  %1316 = vmatpush.msrb.mxu3 %v3406_v5  ;;  %4144 = vst [vmem:[#allocation26_spill] sm:$0xff] %v3418_v24  ;;  %1356 = vmatpush.msra.mxu1 %v3418_v24  ;;  %v3435_v56 = vld [vmem:[%s3997_s4 + $0xf8] sm:$0xff]  ;;  %v3444_v24 = vld [vmem:[%s3997_s4 + $0x100] sm:$0xff] }
 0x173   : > { %1336 = vmatpush.msra.mxu0 %v3411_v17  ;;  %4146 = vst [vmem:[#allocation9_spill] sm:$0xff] %v3430_v11  ;;  %1257 = vmatpush.msrb.mxu2 %v3425_v12  ;;  %v3458_v12 = vld [vmem:[%s3997_s4 + $0xd8] sm:$0xff] }
 0x174   : > { %4147 = vst [vmem:[#allocation28_spill] sm:$0xff] %v3435_v56  ;;  %1317 = vmatpush.msrb.mxu3 %v3430_v11  ;;  %1357 = vmatpush.msra.mxu1 %v3444_v24  ;;  %v3575_v11 = vld [vmem:[%s3997_s4 + $0x68] sm:$0xff] }
 0x175   : > { %4148 = vst [vmem:[#allocation25_spill] sm:$0xff] %v3444_v24  ;;  %1337 = vmatpush.msra.mxu0 %v3435_v56  ;;  %v3472_v24 = vld [vmem:[%s3997_s4 + $0xe8] sm:$0xff]  ;;  %v3549_v56 = vld [vmem:[%s3997_s4 + $0x78] sm:$0xff] }
 0x176   : > { %4150 = vst [vmem:[#allocation27_spill] sm:$0xff] %v3458_v12  ;;  %1318 = vmatpush.msrb.mxu3 %v3458_v12  ;;  %1358 = vmatpush.msra.mxu1 %v3472_v24  ;;  %v3504_v12 = vld [vmem:[%s3997_s4 + $0xa8] sm:$0xff] }
 0x177   : > { %v2123_v54 = vpop.eup %2122  ;;  %4152 = vst [vmem:[#allocation12_spill] sm:$0xff] %v3472_v24  ;;  %1338 = vmatpush.msra.mxu0 %v3463_v44  ;;  %v3497_v24 = vld [vmem:[%s3997_s4 + $0xd0] sm:$0xff] }
 0x178   : > { %v2125_v8 = vpop.eup %2124  ;;  %v3437_v2 = vadd.f32 1.0, %v2123_v54  ;;  %v3453_v54 = vld [vmem:[%s3996_s3 + $0x28] sm:$0xff]  ;;  %4156 = vst [vmem:[#allocation30_spill] sm:$0xff] %v3497_v24  ;;  %1359 = vmatpush.msra.mxu1 %v3497_v24  ;;  %v3523_v24 = vld [vmem:[%s3997_s4 + $0x90] sm:$0xff] }
 0x179   : > { %v3446_v40 = vadd.f32 1.0, %v2125_v8  ;;  %4149 = vst [vmem:[#allocation10_spill] sm:$0xff] %v3453_v54  ;;  %v2053_v8 = vld [vmem:[%s2291_s20 + $0x30] sm:$0xff]  ;;  %1258 = vmatpush.msrb.mxu2 %v3453_v54  ;;  %v3485_v54 = vld [vmem:[%s3997_s4 + $0xc0] sm:$0xff]  ;;  %1339 = vmatpush.msra.mxu0 %v3490_v1  ;;  %v3528_v1 = vld [vmem:[%s3997_s4 + $0x98] sm:$0xff] }
 0x17a   : > { %2126 = vrcp.f32 %v3437_v2  ;;  %4154 = vst [vmem:[#allocation15_spill] sm:$0xff] %v3485_v54  ;;  %1319 = vmatpush.msrb.mxu3 %v3485_v54  ;;  %v3514_v54 = vld [vmem:[%s3997_s4 + $0xb8] sm:$0xff]  ;;  %vm1038_vm9 = vweird.f32 %v3437_v2 }
 0x17b   : > { %2128 = vrcp.f32 %v3446_v40  ;;  %1259 = vmatpush.msrb.mxu2 %v3480_v58  ;;  %4157 = vst [vmem:[#allocation31_spill] sm:$0xff] %v3504_v12  ;;  %v3509_v58 = vld [vmem:[%s3997_s4 + $0xb0] sm:$0xff]  ;;  %1360 = vmatpush.msra.mxu1 %v3514_v54  ;;  %vm1078_vm13 = vweird.f32 %v3446_v40 }
 0x17c   : > { %4158 = vst [vmem:[#allocation32_spill] sm:$0xff] %v3509_v58  ;;  %1320 = vmatpush.msrb.mxu3 %v3504_v12  ;;  %1340 = vmatpush.msra.mxu0 %v3509_v58  ;;  %v2054_v58 = vld [vmem:[%s2291_s20 + $0x38] sm:$0xff] }
 0x17d   : > { %v985_v44 = vpop.f32.mrf.mxu1  ;;  %4159 = vst [vmem:[#allocation33_spill] sm:$0xff] %v3514_v54  ;;  %1546 = vmatpush.msra.mxu2 %v3063_v7 }
 0x17e   : > { %v1048_v59 = vadd.f32 %v2053_v8, %v985_v44  ;;  %4160 = vst [vmem:[#allocation34_spill] sm:$0xff] %v3523_v24  ;;  %v3533_v44 = vld [vmem:[%s3997_s4 + $0xa0] sm:$0xff]  ;;  %1321 = vmatpush.msrb.mxu3 %v3523_v24  ;;  %1341 = vmatpush.msra.mxu0 %v3528_v1 }
 0x17f   : > { %4161 = vst [vmem:[#allocation35_spill] sm:$0xff] %v3528_v1  ;;  %1547 = vmatpush.msra.mxu2 %v3075_v60  ;;  %1361 = vmatpush.msra.mxu1 %v3533_v44  ;;  %v3559_v60 = vld [vmem:[%s3997_s4 + $0x88] sm:$0xff] }
 0x180   : > { %4162 = vst [vmem:[#allocation36_spill] sm:$0xff] %v3533_v44  ;;  %v3535_v7 = vpop.eup %2126  ;;  %v2057_v8 = vmul.f32 -1.442695, %v1048_v59  ;;  %v3554_v59 = vld [vmem:[%s3997_s4 + $0x80] sm:$0xff]  ;;  %1322 = vmatpush.msrb.mxu3 %v3549_v56 }
 0x181   : > { %v3540_v54 = vpop.eup %2128  ;;  %v1034_v12 = vmul.f32 %v3535_v7, %v3437_v2  ;;  %4163 = vst [vmem:[#allocation37_spill] sm:$0xff] %v3549_v56  ;;  %1548 = vmatpush.msra.mxu2 %v3087_v16  ;;  %1342 = vmatpush.msra.mxu0 %v3554_v59  ;;  %vm1039_vm8 = vweird.f32 %v3535_v7 }
 0x182   : > { %4164 = vst [vmem:[#allocation38_spill] sm:$0xff] %v3554_v59  ;;  %v1074_v1 = vmul.f32 %v3540_v54, %v3446_v40  ;;  %2130 = vpow2.f32 %v2057_v8  ;;  %1362 = vmatpush.msra.mxu1 %v3559_v60  ;;  %v1044_v8 = vand.u32 2147483648, %v3437_v2  ;;  %1323 = vmatpush.msrb.mxu3 %v3570_v52  ;;  %v1042_v59 = vand.u32 2147483647, %v3437_v2  ;;  %v3615_v52 = vld [vmem:[%s3997_s4 + $0x30] sm:$0xff]  ;;  %v3625_v2 = vld [vmem:[%s3997_s4 + $0x40] sm:$0xff]  ;;  %vm3629_vm10 = vmor %vm1038_vm9, %vm1039_vm8 }
 0x183   : > { %4165 = vst [vmem:[#allocation39_spill] sm:$0xff] %v3559_v60  ;;  %v1035_v44 = vsub.f32 1.0, %v1034_v12  ;;  %v1005_v24 = vpop.f32.mrf.mxu2  ;;  %v3582_v12 = vld [vmem:[%s3997_s4 + $0x70] sm:$0xff]  ;;  %1549 = vmatpush.msra.mxu2 %v3099_v20  ;;  %1343 = vmatpush.msra.mxu0 %v3575_v11  ;;  %v3603_v20 = vld [vmem:[%s3997_s4 + $0x58] sm:$0xff]  ;;  %vm1079_vm12 = vweird.f32 %v3540_v54 }
 0x184   : > { %4167 = vst [vmem:[#allocation41_spill] sm:$0xff] %v3575_v11  ;;  %v1075_v56 = vsub.f32 1.0, %v1074_v1  ;;  %v1088_v16 = vadd.f32 %v2054_v58, %v1005_v24  ;;  %1363 = vmatpush.msra.mxu1 %v3582_v12  ;;  %v3593_v58 = vld [vmem:[%s3997_s4 + $0x48] sm:$0xff]  ;;  %v3598_v1 = vld [vmem:[%s3997_s4 + $0x50] sm:$0xff]  ;;  %vm1043_vm11 = vcmp.eq.f32.partialorder %v1042_v59, 8.507059e+37  ;;  %vm3692_vm14 = vmor %vm1078_vm13, %vm1079_vm12 }
 0x185   : > { %4168 = vst [vmem:[#allocation42_spill] sm:$0xff] %v3582_v12  ;;  %v1036_v60 = vmul.f32 %v3535_v7, %v1035_v44  ;;  %1324 = vmatpush.msrb.mxu3 %v3593_v58  ;;  %1550 = vmatpush.msra.mxu2 %v3111_v19  ;;  %v917_v44 = vpop.f32.mrf.mxu0  ;;  %v3620_v19 = vld [vmem:[%s3997_s4 + $0x38] sm:$0xff]  ;;  %v3655_v59 = vld [vmem:[%s3997_s4 + $0x28] sm:$0xff] }
 0x186   : > { %4169 = vst [vmem:[#allocation43_spill] sm:$0xff] %v3598_v1  ;;  %v2059_v24 = vmul.f32 -1.442695, %v1088_v16  ;;  %v1076_v11 = vmul.f32 %v3540_v54, %v1075_v56  ;;  %1344 = vmatpush.msra.mxu0 %v3598_v1  ;;  %1364 = vmatpush.msra.mxu1 %v3603_v20  ;;  %v1045_v16 = vor.u32 1.1754944e-38, %v1044_v8  ;;  %v3645_v8 = vld [vmem:[%s3997_s4 + $0x18] sm:$0xff] }
 0x187   : > { %4170 = vst [vmem:[#allocation44_spill] sm:$0xff] %v3603_v20  ;;  %v1037_v12 = vadd.f32 %v3535_v7, %v1036_v60  ;;  %1325 = vmatpush.msrb.mxu3 %v3615_v52  ;;  %1551 = vmatpush.msra.mxu2 %v3123_v25  ;;  %v3650_v25 = vld [vmem:[%s3997_s4 + $0x20] sm:$0xff]  ;;  %v1082_v60 = vand.u32 2147483647, %v3446_v40 }
 0x188   : > { %4171 = vst [vmem:[#allocation45_spill] sm:$0xff] %v3625_v2  ;;  %v2131_v56 = vpop.eup %2130  ;;  %2132 = vpow2.f32 %v2059_v24  ;;  %1345 = vmatpush.msra.mxu0 %v3620_v19  ;;  %1365 = vmatpush.msra.mxu1 %v3625_v2 }
 0x189   : > { %v3635_v20 = vadd.f32 1.0, %v2131_v56  ;;  %v1041_v1 = vsel %vm3629_vm10, %v3535_v7, %v1037_v12  ;;  %4174 = vst [vmem:[#allocation46_spill] sm:$0xff] %v3655_v59  ;;  %v1108_v7 = vadd.f32 %v3007_v63, %v917_v44  ;;  %v2052_v12 = vld [vmem:[%s2286_s13 + $0x28] sm:$0xff]  ;;  %1326 = vmatpush.msrb.mxu3 %v3645_v8  ;;  %1552 = vmatpush.msra.mxu2 %v3135_v27  ;;  %v3669_v63 = vld [vmem:[%s3997_s4] sm:$0xff]  ;;  %vm1083_vm0 = vcmp.eq.f32.partialorder %v1082_v60, 8.507059e+37 }
 0x18a   : > { %v1046_v24 = vsel %vm1043_vm11, %v1045_v16, %v1041_v1  ;;  %v1077_v56 = vadd.f32 %v3540_v54, %v1076_v11  ;;  %1346 = vmatpush.msra.mxu0 %v3650_v25  ;;  %1366 = vmatpush.msra.mxu1 %v3655_v59  ;;  %v3674_v27 = vld [vmem:[%s3997_s4 + $0x8] sm:$0xff]  ;;  %v3679_v11 = vld [vmem:[%s3997_s4 + $0x10] sm:$0xff]  ;;  %v1084_v1 = vand.u32 2147483648, %v3446_v40 }
 0x18b   : > { %2134 = vrcp.f32 %v3635_v20  ;;  %4175 = vst [vmem:[#allocation47_spill] sm:$0xff] %v3679_v11  ;;  %v1109_v44 = vmul.f32 %v1108_v7, %v1046_v24  ;;  %1327 = vmatpush.msrb.mxu3 %v3669_v63  ;;  %1553 = vmatpush.msra.mxu2 %v3147_v30  ;;  %v1468_v24 = vstv %s1146_s11  ;;  %v1062_v60 = vand.u32 2147483647, %v3635_v20 }
 0x18c   : > { %1347 = vmatpush.msra.mxu0 %v3674_v27  ;;  %1367 = vmatpush.msra.mxu1 %v3679_v11  ;;  %v1081_v40 = vsel %vm3692_vm14, %v3540_v54, %v1077_v56  ;;  %v2182_v11 = vld [vmem:[%s3993_s0] sm:$0xff]  ;;  %v1085_v2 = vor.u32 1.1754944e-38, %v1084_v1  ;;  %vm1058_vm3 = vweird.f32 %v3635_v20 }
 0x18d   : > { %v1110_v7 = vadd.f32 %v2052_v12, %v1109_v44  ;;  %1566 = vmatpush.msra.mxu3 %v3068_v10  ;;  %1554 = vmatpush.msra.mxu2 %v3165_v34  ;;  %vm1469_vm15 = vcmp.lt.s32.totalorder %v1468_v24, %v2182_v11  ;;  %v1470_v44 = vstv %s1147_s17  ;;  %vm1063_vm6 = vcmp.eq.f32.partialorder %v1062_v60, 8.507059e+37  ;;  %v4200_v60 = vld [vmem:[#allocation37_spill] sm:$0xff] }
 0x18e   : > { %v2133_v16 = vpop.eup %2132  ;;  %v1472_v12 = vsel %vm1469_vm15, 1, %v4102_v6  ;;  %v1086_v54 = vsel %vm1083_vm0, %v1085_v2, %v1081_v40  ;;  %vm1471_vm1 = vcmp.lt.s32.totalorder %v1470_v44, %v2182_v11  ;;  %v1131_v11 = vpop.permute.xlu1 %1130 }
 0x18f   : > { %v3698_v30 = vadd.f32 1.0, %v2133_v16  ;;  %2136 = vtanh.f32 %v1110_v7  ;;  %1567 = vmatpush.msra.mxu3 %v3080_v13  ;;  %1555 = vmatpush.msra.mxu2 %v3183_v28  ;;  %v1064_v13 = vand.u32 2147483648, %v3635_v20  ;;  %v1116_v28 = vsub.f32 1.0, %v1086_v54 }
 0x190   : > { %1474 = vperm.xlu2 %2099, %v1472_v12   ;;  %v1478_v2 = vsel %vm1471_vm1, 1, %v4102_v6  ;;  %vm1132_vm4 = vcmp.eq.s32.totalorder %v1131_v11, 1  ;;  %v4204_v11 = vld [vmem:[#allocation40_spill] sm:$0xff] }
 0x191   : > { %v2135_v10 = vpop.eup %2134  ;;  %2138 = vrcp.f32 %v3698_v30  ;;  %1568 = vmatpush.msra.mxu3 %v3092_v18  ;;  %1556 = vmatpush.msra.mxu2 %v3201_v38  ;;  %v1025_v38 = vpop.f32.mrf.mxu3  ;;  %v1065_v6 = vor.u32 1.1754944e-38, %v1064_v13  ;;  %vm1098_vm8 = vweird.f32 %v3698_v30  ;;  %v4196_v13 = vld [vmem:[#allocation34_spill] sm:$0xff] }
 0x192   : > { %v1054_v34 = vmul.f32 %v2135_v10, %v3635_v20  ;;  %vm1059_vm2 = vweird.f32 %v2135_v10  ;;  %v1112_v40 = vadd.f32 %v3034_v41, %v1025_v38  ;;  %v2055_v20 = vld [vmem:[%s2291_s20 + $0x40] sm:$0xff]  ;;  %v1102_v41 = vand.u32 2147483647, %v3698_v30  ;;  %v4203_v38 = vld [vmem:[#allocation21_spill] sm:$0xff] }
 0x193   : > { %1569 = vmatpush.msra.mxu3 %v3104_v22  ;;  %1557 = vmatpush.msra.mxu2 %v3219_v43  ;;  %v1118_v43 = vmul.f32 %v1086_v54, %v3041_v53  ;;  %vm1060_vm5 = vmor %vm1058_vm3, %vm1059_vm2 }
 0x194   : > { %v1055_v59 = vsub.f32 1.0, %v1054_v34  ;;  %vm1103_vm10 = vcmp.eq.f32.partialorder %v1102_v41, 8.507059e+37 }
 0x195   : > { %v2137_v56 = vpop.eup %2136  ;;  %1570 = vmatpush.msra.mxu3 %v3116_v23  ;;  %1558 = vmatpush.msra.mxu2 %v3237_v47 }
 0x196   : > { %v1056_v1 = vmul.f32 %v2135_v10, %v1055_v59  ;;  %v1117_v22 = vmul.f32 %v2137_v56, %v1116_v28  ;;  %v4195_v59 = vld [vmem:[#allocation6_spill] sm:$0xff]  ;;  %v4197_v28 = vld [vmem:[#allocation35_spill] sm:$0xff]  ;;  %v4198_v56 = vld [vmem:[#allocation8_spill] sm:$0xff] }
 0x197   : > { %v2139_v18 = vpop.eup %2138  ;;  %1571 = vmatpush.msra.mxu3 %v3128_v26  ;;  %1559 = vmatpush.msra.mxu2 %v3255_v51 }
 0x198   : > { %v1094_v16 = vmul.f32 %v2139_v18, %v3698_v30  ;;  %v1057_v7 = vadd.f32 %v2135_v10, %v1056_v1  ;;  %v1119_v23 = vadd.f32 %v1118_v43, %v1117_v22  ;;  %1480 = vperm.xlu2 %2099, %v1478_v2   ;;  %vm1099_vm7 = vweird.f32 %v2139_v18  ;;  %v4199_v1 = vld [vmem:[#allocation18_spill] sm:$0xff]  ;;  %v4205_v22 = vld [vmem:[#allocation41_spill] sm:$0xff] }
 0x199   : > { %1572 = vmatpush.msra.mxu3 %v3140_v29  ;;  %1560 = vmatpush.msra.mxu2 %v3275_v57  ;;  %vm1100_vm9 = vmor %vm1098_vm8, %vm1099_vm7  ;;  %v4201_v2 = vld [vmem:[#allocation38_spill] sm:$0xff] }
 0x19a   : > { %v1095_v47 = vsub.f32 1.0, %v1094_v16  ;;  %v1061_v24 = vsel %vm1060_vm5, %v2135_v10, %v1057_v7  ;;  %v3732_v26 = vsel %vm1132_vm4, %v1119_v23, %v3041_v53  ;;  %v1140_v51 = vsel %vm1132_vm4, %v1119_v23, 0.0  ;;  %v4206_v43 = vld [vmem:[#allocation10_spill] sm:$0xff]  ;;  %v4208_v7 = vld [vmem:[#allocation43_spill] sm:$0xff]  ;;  %v4210_v23 = vld [vmem:[#allocation25_spill] sm:$0xff] }
 0x19b   : > { %v1066_v12 = vsel %vm1063_vm6, %v1065_v6, %v1061_v24  ;;  %2060 = vst [vmem:[%s2281_s29 + $0x8] sm:$0xff] %v1140_v51  ;;  %v1104_v10 = vand.u32 2147483648, %v3698_v30  ;;  %1220 = vmatmul.f32.vlgmr.msrb.gmra.mxu0 %v3732_v26  ;;  %1240 = vmatmul.f32.vlgmr.msrb.gmra.mxu1 %v3732_v26  ;;  %v4194_v30 = vld [vmem:[#allocation7_spill] sm:$0xff]  ;;  %v4207_v16 = vld [vmem:[#allocation26_spill] sm:$0xff] }
 0x19c   : > { %v1113_v44 = vmul.f32 %v1112_v40, %v1066_v12  ;;  %v1096_v34 = vmul.f32 %v2139_v18, %v1095_v47  ;;  %1260 = vmatmul.f32.vlgmr.msrb.gmra.mxu2 %v3732_v26  ;;  %1586 = vmatpush.msrb.mxu0 %v3159_v33  ;;  %v4209_v6 = vld [vmem:[#allocation14_spill] sm:$0xff]  ;;  %v4211_v47 = vld [vmem:[#allocation12_spill] sm:$0xff]  ;;  %v4218_v12 = vld [vmem:[#allocation45_spill] sm:$0xff] }
 0x19d   : > { %1573 = vmatpush.msra.mxu3 %v3152_v31  ;;  %1561 = vmatpush.msra.mxu2 %v3293_v0  ;;  %v1105_v54 = vor.u32 1.1754944e-38, %v1104_v10  ;;  %v4212_v24 = vld [vmem:[#allocation30_spill] sm:$0xff]  ;;  %v4214_v40 = vld [vmem:[#allocation36_spill] sm:$0xff] }
 0x19e   : > { %v1114_v53 = vadd.f32 %v2055_v20, %v1113_v44  ;;  %v1097_v29 = vadd.f32 %v2139_v18, %v1096_v34  ;;  %1587 = vmatpush.msrb.mxu0 %v3177_v36  ;;  %1654 = vmatpush.msrb.mxu1 %v3310_v48  ;;  %v4181_v48 = vld [vmem:[#allocation13_spill] sm:$0xff]  ;;  %v4217_v20 = vld [vmem:[#allocation44_spill] sm:$0xff]  ;;  %v2063_v51 = vld [vmem:[%s2286_s13 + $0x38] sm:$0xff] }
 0x19f   : > { %1574 = vmatpush.msra.mxu3 %v3170_v35  ;;  %1674 = vmatpush.msrb.mxu2 %v3315_v14  ;;  %v4184_v14 = vld [vmem:[#allocation20_spill] sm:$0xff] }
 0x1a0   : > { %2140 = vtanh.f32 %v1114_v53  ;;  %v1101_v57 = vsel %vm1100_vm9, %v2139_v18, %v1097_v29  ;;  %1588 = vmatpush.msrb.mxu0 %v3195_v32  ;;  %1655 = vmatpush.msrb.mxu1 %v3334_v9  ;;  %v1137_v32 = vpop.permute.xlu1 %1136  ;;  %v4185_v9 = vld [vmem:[#allocation11_spill] sm:$0xff]  ;;  %v4202_v18 = vld [vmem:[#allocation24_spill] sm:$0xff] }
 0x1a1   : > { %v1106_v31 = vsel %vm1103_vm10, %v1105_v54, %v1101_v57  ;;  %1575 = vmatpush.msra.mxu3 %v3188_v37  ;;  %1675 = vmatpush.msrb.mxu2 %v3341_v21  ;;  %vm1138_vm11 = vcmp.eq.s32.totalorder %v1137_v32, 1  ;;  %v4187_v21 = vld [vmem:[#allocation15_spill] sm:$0xff] }
 0x1a2   : > { %1589 = vmatpush.msrb.mxu0 %v3213_v42  ;;  %1656 = vmatpush.msrb.mxu1 %v3358_v15  ;;  %v1120_v33 = vsub.f32 1.0, %v1106_v31  ;;  %v1122_v37 = vmul.f32 %v1106_v31, %v3054_v3  ;;  %v4178_v42 = vld [vmem:[#allocation9_spill] sm:$0xff] }
 0x1a3   : > { %1576 = vmatpush.msra.mxu3 %v3206_v39  ;;  %1676 = vmatpush.msrb.mxu2 %v3363_v4  ;;  %v4188_v15 = vld [vmem:[#allocation5_spill] sm:$0xff] }
 0x1a4   : > { %1590 = vmatpush.msrb.mxu0 %v3231_v46  ;;  %1657 = vmatpush.msrb.mxu1 %v3382_v61  ;;  %v4180_v46 = vld [vmem:[#allocation28_spill] sm:$0xff]  ;;  %v4189_v4 = vld [vmem:[#allocation29_spill] sm:$0xff]  ;;  %v4190_v61 = vld [vmem:[#allocation22_spill] sm:$0xff] }
 0x1a5   : > { %1577 = vmatpush.msra.mxu3 %v3224_v45  ;;  %1677 = vmatpush.msrb.mxu2 %v3387_v62  ;;  %v4179_v45 = vld [vmem:[#allocation17_spill] sm:$0xff]  ;;  %v4191_v62 = vld [vmem:[#allocation23_spill] sm:$0xff] }
 0x1a6   : > { %v2141_v35 = vpop.eup %2140  ;;  %1591 = vmatpush.msrb.mxu0 %v3249_v50  ;;  %1658 = vmatpush.msrb.mxu1 %v3406_v5  ;;  %v4192_v5 = vld [vmem:[#allocation31_spill] sm:$0xff] }
 0x1a7   : > { %v1121_v36 = vmul.f32 %v2141_v35, %v1120_v33  ;;  %1578 = vmatpush.msra.mxu3 %v3242_v49  ;;  %1678 = vmatpush.msrb.mxu2 %v3411_v17  ;;  %v4182_v49 = vld [vmem:[#allocation27_spill] sm:$0xff]  ;;  %v4193_v17 = vld [vmem:[#allocation32_spill] sm:$0xff] }
 0x1a8   : > { %1592 = vmatpush.msrb.mxu0 %v3268_v55  ;;  %1659 = vmatpush.msrb.mxu1 %v4178_v42  ;;  %v4183_v55 = vld [vmem:[#allocation19_spill] sm:$0xff] }
 0x1a9   : > { %v1123_v39 = vadd.f32 %v1122_v37, %v1121_v36  ;;  %1579 = vmatpush.msra.mxu3 %v4179_v45  ;;  %1679 = vmatpush.msrb.mxu2 %v4180_v46  ;;  %v2066_v33 = vld [vmem:[%s2291_s20 + $0x20] sm:$0xff] }
 0x1aa   : > { %1593 = vmatpush.msrb.mxu0 %v4181_v48  ;;  %1660 = vmatpush.msrb.mxu1 %v4182_v49 }
 0x1ab   : > { %v3771_v0 = vsel %vm1138_vm11, %v1123_v39, %v3054_v3  ;;  %v1143_v50 = vsel %vm1138_vm11, %v1123_v39, 0.0  ;;  %1580 = vmatpush.msra.mxu3 %v4184_v14  ;;  %1680 = vmatpush.msrb.mxu2 %v4185_v9  ;;  %v4186_v3 = vld [vmem:[#allocation16_spill] sm:$0xff]  ;;  %v2065_v39 = vld [vmem:[%s2291_s20 + $0x18] sm:$0xff] }
 0x1ac   : > { %2061 = vst [vmem:[%s2296_s22 + $0x10] sm:$0xff] %v1143_v50  ;;  %1328 = vmatmul.f32.vlgmr.msrb.gmra.mxu3 %v3771_v0  ;;  %1348 = vmatmul.f32.vlgmr.msra.gmra.mxu0 %v3771_v0 }
 0x1ad   : > { %1368 = vmatmul.f32.vlgmr.msra.gmra.mxu1 %v3771_v0  ;;  %1594 = vmatpush.msrb.mxu0 %v4183_v55 }
 0x1ae   : > { %1661 = vmatpush.msrb.mxu1 %v4187_v21  ;;  %1581 = vmatpush.msra.mxu3 %v4188_v15 }
 0x1af   : > { %1595 = vmatpush.msrb.mxu0 %v4186_v3  ;;  %1681 = vmatpush.msrb.mxu2 %v4189_v4 }
 0x1b0   : > { %1694 = vmatpush.msrb.mxu3 %v4191_v62  ;;  %1662 = vmatpush.msrb.mxu1 %v4192_v5 }
 0x1b1   : > { %1596 = vmatpush.msrb.mxu0 %v4190_v61  ;;  %1682 = vmatpush.msrb.mxu2 %v4193_v17 }
 0x1b2   : > { %1695 = vmatpush.msrb.mxu3 %v4195_v59  ;;  %1663 = vmatpush.msrb.mxu1 %v4196_v13  ;;  %v3833_v59 = vld [vmem:[%s3998_s5] ss:$0 sm:$0xff] }
 0x1b3   : > { %1597 = vmatpush.msrb.mxu0 %v4194_v30  ;;  %1683 = vmatpush.msrb.mxu2 %v4197_v28  ;;  %v2064_v28 = vld [vmem:[%s2286_s13 + $0x40] sm:$0xff] }
 0x1b4   : > { %1696 = vmatpush.msrb.mxu3 %v4199_v1  ;;  %1664 = vmatpush.msrb.mxu1 %v4200_v60 }
 0x1b5   : > { %1598 = vmatpush.msrb.mxu0 %v4198_v56  ;;  %1684 = vmatpush.msrb.mxu2 %v4201_v2 }
 0x1b6   : > { %1697 = vmatpush.msrb.mxu3 %v4203_v38  ;;  %1665 = vmatpush.msrb.mxu1 %v4204_v11 }
 0x1b7   : > { %1599 = vmatpush.msrb.mxu0 %v4202_v18  ;;  %1685 = vmatpush.msrb.mxu2 %v4205_v22 }
 0x1b8   : > { %1698 = vmatpush.msrb.mxu3 %v4207_v16  ;;  %1666 = vmatpush.msrb.mxu1 %v3593_v58  ;;  %v4213_v58 = vld [vmem:[#allocation33_spill] sm:$0xff] }
 0x1b9   : > { %1600 = vmatpush.msrb.mxu0 %v4206_v43  ;;  %1686 = vmatpush.msrb.mxu2 %v4208_v7 }
 0x1ba   : > { %1699 = vmatpush.msrb.mxu3 %v4210_v23  ;;  %1667 = vmatpush.msrb.mxu1 %v3615_v52  ;;  %v4215_v52 = vld [vmem:[#allocation39_spill] sm:$0xff] }
 0x1bb   : > { %1601 = vmatpush.msrb.mxu0 %v4209_v6  ;;  %1687 = vmatpush.msrb.mxu2 %v3620_v19  ;;  %v4216_v19 = vld [vmem:[#allocation42_spill] sm:$0xff] }
 0x1bc   : > { %1700 = vmatpush.msrb.mxu3 %v4211_v47  ;;  %1668 = vmatpush.msrb.mxu1 %v3645_v8  ;;  %v4219_v8 = vld [vmem:[#allocation46_spill] sm:$0xff] }
 0x1bd   : > { %1688 = vmatpush.msrb.mxu2 %v3650_v25  ;;  %v4220_v25 = vld [vmem:[#allocation47_spill] sm:$0xff] }
 0x1be   : > { %1701 = vmatpush.msrb.mxu3 %v4212_v24  ;;  %1669 = vmatpush.msrb.mxu1 %v3669_v63  ;;  %v2062_v63 = vld [vmem:[%s2286_s13 + $0x30] sm:$0xff] }
 0x1bf   : > { %1689 = vmatpush.msrb.mxu2 %v3674_v27 }
 0x1c0   : > { %1702 = vmatpush.msrb.mxu3 %v4213_v58 }
 0x1c2   : > { %1703 = vmatpush.msrb.mxu3 %v4214_v40 }
 0x1c4   : > { %1704 = vmatpush.msrb.mxu3 %v4215_v52 }
 0x1c6   : > { %1705 = vmatpush.msrb.mxu3 %v4216_v19 }
 0x1c8   : > { %1706 = vmatpush.msrb.mxu3 %v4217_v20 }
 0x1ca   : > { %1707 = vmatpush.msrb.mxu3 %v4218_v12 }
 0x1cc   : > { %1708 = vmatpush.msrb.mxu3 %v4219_v8 }
 0x1ce   : > { %1709 = vmatpush.msrb.mxu3 %v4220_v25 }
 0x1ea   : > { %v1475_v47 = vpop.permute.xlu2 %1474 }
 0x1eb   : > { %vm1476_vm4 = vcmp.eq.s32.totalorder %v1475_v47, 1 }
 0x218   : > { %v1221_v27 = vpop.f32.mrf.mxu0  ;;  %v1241_v44 = vpop.f32.mrf.mxu1 }
 0x219   : > { %v1372_v34 = vadd.f32 %v2062_v63, %v1221_v27  ;;  %v1412_v10 = vadd.f32 %v2063_v51, %v1241_v44 }
 0x21b   : > { %v2068_v41 = vmul.f32 -1.442695, %v1372_v34  ;;  %v2070_v53 = vmul.f32 -1.442695, %v1412_v10 }
 0x21d   : > { %2142 = vpow2.f32 %v2068_v41 }
 0x21e   : > { %2144 = vpow2.f32 %v2070_v53 }
 0x21f   : > { %v1261_v15 = vpop.f32.mrf.mxu2 }
 0x220   : > { %v1452_v13 = vadd.f32 %v3833_v59, %v1261_v15  ;;  %v2074_v15 = vld [vmem:[%s2286_s13 + $0x48] sm:$0xff] }
 0x223   : > { %v2143_v29 = vpop.eup %2142 }
 0x224   : > { %v2145_v57 = vpop.eup %2144  ;;  %v1376_v54 = vadd.f32 1.0, %v2143_v29 }
 0x225   : > { %v1416_v31 = vadd.f32 1.0, %v2145_v57 }
 0x226   : > { %2146 = vrcp.f32 %v1376_v54  ;;  %v1388_v14 = vand.u32 2147483648, %v1376_v54  ;;  %v1386_v3 = vand.u32 2147483647, %v1376_v54  ;;  %vm1382_vm13 = vweird.f32 %v1376_v54 }
 0x227   : > { %2148 = vrcp.f32 %v1416_v31  ;;  %v1428_v2 = vand.u32 2147483648, %v1416_v31  ;;  %vm1422_vm1 = vweird.f32 %v1416_v31  ;;  %v1426_v18 = vand.u32 2147483647, %v1416_v31 }
 0x228   : > { %v1389_v5 = vor.u32 1.1754944e-38, %v1388_v14  ;;  %vm1387_vm15 = vcmp.eq.f32.partialorder %v1386_v3, 8.507059e+37 }
 0x229   : > { %v1349_v35 = vpop.f32.mrf.mxu0  ;;  %v1429_v16 = vor.u32 1.1754944e-38, %v1428_v2  ;;  %vm1427_vm3 = vcmp.eq.f32.partialorder %v1426_v18, 8.507059e+37 }
 0x22a   : > { %v1432_v36 = vadd.f32 %v2066_v33, %v1349_v35  ;;  %v1369_v10 = vpop.f32.mrf.mxu1 }
 0x22c   : > { %v2071_v37 = vmul.f32 -1.442695, %v1432_v36  ;;  %v2147_v32 = vpop.eup %2146 }
 0x22d   : > { %v2149_v42 = vpop.eup %2148  ;;  %v1378_v45 = vmul.f32 %v2147_v32, %v1376_v54  ;;  %vm1383_vm12 = vweird.f32 %v2147_v32 }
 0x22e   : > { %2150 = vpow2.f32 %v2071_v37  ;;  %v1418_v46 = vmul.f32 %v2149_v42, %v1416_v31  ;;  %vm1384_vm14 = vmor %vm1382_vm13, %vm1383_vm12  ;;  %vm1423_vm0 = vweird.f32 %v2149_v42  ;;  %v2067_v31 = vld [vmem:[%s2291_s20 + $0x28] sm:$0xff] }
 0x22f   : > { %v1329_v50 = vpop.f32.mrf.mxu3  ;;  %v1379_v48 = vsub.f32 1.0, %v1378_v45  ;;  %vm1424_vm2 = vmor %vm1422_vm1, %vm1423_vm0 }
 0x230   : > { %v1392_v49 = vadd.f32 %v2065_v39, %v1329_v50  ;;  %v1419_v55 = vsub.f32 1.0, %v1418_v46 }
 0x231   : > { %v1380_v9 = vmul.f32 %v2147_v32, %v1379_v48 }
 0x232   : > { %v2069_v21 = vmul.f32 -1.442695, %v1392_v49  ;;  %v1420_v4 = vmul.f32 %v2149_v42, %v1419_v55  ;;  %v1481_v49 = vpop.permute.xlu2 %1480 }
 0x233   : > { %v1381_v62 = vadd.f32 %v2147_v32, %v1380_v9  ;;  %vm1482_vm13 = vcmp.eq.s32.totalorder %v1481_v49, 1 }
 0x234   : > { %v2151_v61 = vpop.eup %2150  ;;  %2152 = vpow2.f32 %v2069_v21  ;;  %v1421_v1 = vadd.f32 %v2149_v42, %v1420_v4  ;;  %v2075_v4 = vld [vmem:[%s2286_s13 + $0x50] sm:$0xff] }
 0x235   : > { %v3828_v17 = vadd.f32 1.0, %v2151_v61  ;;  %v1385_v30 = vsel %vm1384_vm14, %v2147_v32, %v1381_v62 }
 0x236   : > { %v1390_v56 = vsel %vm1387_vm15, %v1389_v5, %v1385_v30  ;;  %v1425_v43 = vsel %vm1424_vm2, %v2149_v42, %v1421_v1 }
 0x237   : > { %v1453_v60 = vmul.f32 %v1452_v13, %v1390_v56  ;;  %2154 = vrcp.f32 %v3828_v17  ;;  %v1430_v6 = vsel %vm1427_vm3, %v1429_v16, %v1425_v43  ;;  %v1448_v36 = vand.u32 2147483648, %v3828_v17 }
 0x238   : > { %v1460_v24 = vsub.f32 1.0, %v1430_v6  ;;  %v1462_v19 = vmul.f32 %v1430_v6, %v3732_v26  ;;  %vm1442_vm10 = vweird.f32 %v3828_v17  ;;  %v1446_v32 = vand.u32 2147483647, %v3828_v17 }
 0x239   : > { %v1454_v11 = vadd.f32 %v2064_v28, %v1453_v60  ;;  %v1449_v45 = vor.u32 1.1754944e-38, %v1448_v36  ;;  %v1495_v60 = vld [vmem:[%s2291_s20] sm:$0xff] }
 0x23a   : > { %v2153_v38 = vpop.eup %2152  ;;  %vm1447_vm12 = vcmp.eq.f32.partialorder %v1446_v32, 8.507059e+37 }
 0x23b   : > { %v1396_v22 = vadd.f32 1.0, %v2153_v38  ;;  %2156 = vtanh.f32 %v1454_v11 }
 0x23d   : > { %2158 = vrcp.f32 %v1396_v22  ;;  %v2155_v7 = vpop.eup %2154  ;;  %v1408_v63 = vand.u32 2147483648, %v1396_v22  ;;  %v1406_v34 = vand.u32 2147483647, %v1396_v22  ;;  %vm1402_vm6 = vweird.f32 %v1396_v22 }
 0x23e   : > { %v1438_v23 = vmul.f32 %v2155_v7, %v3828_v17  ;;  %vm1443_vm9 = vweird.f32 %v2155_v7 }
 0x23f   : > { %v1409_v29 = vor.u32 1.1754944e-38, %v1408_v63  ;;  %vm1407_vm8 = vcmp.eq.f32.partialorder %v1406_v34, 8.507059e+37  ;;  %vm1444_vm11 = vmor %vm1442_vm10, %vm1443_vm9 }
 0x240   : > { %v1439_v12 = vsub.f32 1.0, %v1438_v23 }
 0x241   : > { %v2157_v58 = vpop.eup %2156 }
 0x242   : > { %v1461_v52 = vmul.f32 %v2157_v58, %v1460_v24  ;;  %v1440_v41 = vmul.f32 %v2155_v7, %v1439_v12 }
 0x243   : > { %v2159_v40 = vpop.eup %2158 }
 0x244   : > { %v1398_v20 = vmul.f32 %v2159_v40, %v1396_v22  ;;  %v1463_v8 = vadd.f32 %v1462_v19, %v1461_v52  ;;  %vm1403_vm5 = vweird.f32 %v2159_v40  ;;  %v1441_v35 = vadd.f32 %v2155_v7, %v1440_v41  ;;  %v1496_v22 = vld [vmem:[%s2291_s20 + $0x8] sm:$0xff] }
 0x245   : > { %vm1404_vm7 = vmor %vm1402_vm6, %vm1403_vm5 }
 0x246   : > { %v1399_v25 = vsub.f32 1.0, %v1398_v20  ;;  %v3841_v51 = vsel %vm1476_vm4, %v1463_v8, %v3732_v26  ;;  %v1484_v27 = vsel %vm1476_vm4, %v1463_v8, 0.0  ;;  %v3850_v26 = vld [vmem:[%s3999_s6] ss:$0 sm:$0xff]  ;;  %v1445_v42 = vsel %vm1444_vm11, %v2155_v7, %v1441_v35 }
 0x247   : > { %2072 = vst [vmem:[%s2281_s29 + $0x10] sm:$0xff] %v1484_v27  ;;  %1562 = vmatmul.f32.vlgmr.msra.gmra.mxu2 %v3841_v51  ;;  %1582 = vmatmul.f32.vlgmr.msra.gmra.mxu3 %v3841_v51  ;;  %v1456_v57 = vadd.f32 %v3850_v26, %v1369_v10  ;;  %v1450_v46 = vsel %vm1447_vm12, %v1449_v45, %v1445_v42  ;;  %v2076_v10 = vld [vmem:[%s2286_s13 + $0x58] sm:$0xff] }
 0x248   : > { %v1400_v44 = vmul.f32 %v2159_v40, %v1399_v25  ;;  %1602 = vmatmul.f32.vlgmr.msrb.gmra.mxu0 %v3841_v51  ;;  %v1464_v50 = vsub.f32 1.0, %v1450_v46  ;;  %v1466_v14 = vmul.f32 %v1450_v46, %v3771_v0 }
 0x24a   : > { %v1401_v53 = vadd.f32 %v2159_v40, %v1400_v44 }
 0x24c   : > { %v1405_v54 = vsel %vm1404_vm7, %v2159_v40, %v1401_v53 }
 0x24d   : > { %v1410_v33 = vsel %vm1407_vm8, %v1409_v29, %v1405_v54 }
 0x24e   : > { %v1457_v37 = vmul.f32 %v1456_v57, %v1410_v33 }
 0x250   : > { %v1458_v39 = vadd.f32 %v2067_v31, %v1457_v37 }
 0x252   : > { %2160 = vtanh.f32 %v1458_v39 }
 0x258   : > { %v2161_v48 = vpop.eup %2160 }
 0x259   : > { %v1465_v55 = vmul.f32 %v2161_v48, %v1464_v50  ;;  %v1817_v48 = vpop.permute.xlu0 %1816 }
 0x25a   : > { %vm1818_vm8 = vcmp.eq.s32.totalorder %v1817_v48, 1 }
 0x25b   : > { %v1467_v9 = vadd.f32 %v1466_v14, %v1465_v55 }
 0x25d   : > { %v3859_v3 = vsel %vm1482_vm13, %v1467_v9, %v3771_v0  ;;  %v1487_v21 = vsel %vm1482_vm13, %v1467_v9, 0.0 }
 0x25e   : > { %2073 = vst [vmem:[%s2296_s22 + $0x8] sm:$0xff] %v1487_v21  ;;  %1670 = vmatmul.f32.vlgmr.msrb.gmra.mxu1 %v3859_v3  ;;  %1690 = vmatmul.f32.vlgmr.msrb.gmra.mxu2 %v3859_v3 }
 0x25f   : > { %1710 = vmatmul.f32.vlgmr.msrb.gmra.mxu3 %v3859_v3 }
 0x2c5   : > { %v1603_v20 = vpop.f32.mrf.mxu0 }
 0x2c6   : > { %v1794_v44 = vadd.f32 %v3833_v59, %v1603_v20 }
 0x2ca   : > { %v1563_v61 = vpop.f32.mrf.mxu2  ;;  %v1583_v62 = vpop.f32.mrf.mxu3 }
 0x2cb   : > { %v1714_v5 = vadd.f32 %v2074_v15, %v1563_v61  ;;  %v1754_v17 = vadd.f32 %v2075_v4, %v1583_v62 }
 0x2cd   : > { %v2077_v30 = vmul.f32 -1.442695, %v1714_v5  ;;  %v2079_v13 = vmul.f32 -1.442695, %v1754_v17 }
 0x2cf   : > { %2162 = vpow2.f32 %v2077_v30 }
 0x2d0   : > { %2164 = vpow2.f32 %v2079_v13 }
 0x2d5   : > { %v2163_v0 = vpop.eup %2162 }
 0x2d6   : > { %v2165_v28 = vpop.eup %2164  ;;  %v1718_v56 = vadd.f32 1.0, %v2163_v0 }
 0x2d7   : > { %v1758_v1 = vadd.f32 1.0, %v2165_v28 }
 0x2d8   : > { %2166 = vrcp.f32 %v1718_v56  ;;  %v1730_v24 = vand.u32 2147483648, %v1718_v56  ;;  %v1728_v52 = vand.u32 2147483647, %v1718_v56  ;;  %vm1724_vm15 = vweird.f32 %v1718_v56 }
 0x2d9   : > { %2168 = vrcp.f32 %v1758_v1  ;;  %v1770_v57 = vand.u32 2147483648, %v1758_v1  ;;  %vm1764_vm3 = vweird.f32 %v1758_v1  ;;  %v1768_v54 = vand.u32 2147483647, %v1758_v1 }
 0x2da   : > { %v1731_v63 = vor.u32 1.1754944e-38, %v1730_v24  ;;  %vm1729_vm1 = vcmp.eq.f32.partialorder %v1728_v52, 8.507059e+37 }
 0x2db   : > { %v1671_v2 = vpop.f32.mrf.mxu1  ;;  %v1771_v37 = vor.u32 1.1754944e-38, %v1770_v57  ;;  %vm1769_vm5 = vcmp.eq.f32.partialorder %v1768_v54, 8.507059e+37 }
 0x2dc   : > { %v1734_v18 = vadd.f32 %v1671_v2, %v1495_v60 }
 0x2de   : > { %v2078_v38 = vmul.f32 -1.442695, %v1734_v18  ;;  %v2167_v11 = vpop.eup %2166 }
 0x2df   : > { %v2169_v43 = vpop.eup %2168  ;;  %v1720_v16 = vmul.f32 %v2167_v11, %v1718_v56  ;;  %vm1725_vm14 = vweird.f32 %v2167_v11  ;;  %v1497_v56 = vld [vmem:[%s2291_s20 + $0x10] sm:$0xff] }
 0x2e0   : > { %2170 = vpow2.f32 %v2078_v38  ;;  %v1760_v7 = vmul.f32 %v2169_v43, %v1758_v1  ;;  %vm1726_vm0 = vmor %vm1724_vm15, %vm1725_vm14  ;;  %vm1765_vm2 = vweird.f32 %v2169_v43 }
 0x2e1   : > { %v1691_v6 = vpop.f32.mrf.mxu2  ;;  %v1721_v23 = vsub.f32 1.0, %v1720_v16  ;;  %vm1766_vm4 = vmor %vm1764_vm3, %vm1765_vm2 }
 0x2e2   : > { %v1774_v47 = vadd.f32 %v1691_v6, %v1496_v22  ;;  %v1761_v58 = vsub.f32 1.0, %v1760_v7  ;;  %v1711_v15 = vpop.f32.mrf.mxu3  ;;  %v1823_v6 = vpop.permute.xlu1 %1822 }
 0x2e3   : > { %v1722_v40 = vmul.f32 %v2167_v11, %v1721_v23  ;;  %v1798_v13 = vadd.f32 %v3850_v26, %v1711_v15  ;;  %vm1824_vm15 = vcmp.eq.s32.totalorder %v1823_v6, 1 }
 0x2e4   : > { %v2080_v19 = vmul.f32 -1.442695, %v1774_v47  ;;  %v1762_v12 = vmul.f32 %v2169_v43, %v1761_v58 }
 0x2e5   : > { %v1723_v25 = vadd.f32 %v2167_v11, %v1722_v40 }
 0x2e6   : > { %v2171_v8 = vpop.eup %2170  ;;  %2172 = vpow2.f32 %v2080_v19  ;;  %v1763_v53 = vadd.f32 %v2169_v43, %v1762_v12 }
 0x2e7   : > { %v1738_v27 = vadd.f32 1.0, %v2171_v8  ;;  %v1727_v34 = vsel %vm1726_vm0, %v2167_v11, %v1723_v25 }
 0x2e8   : > { %v1732_v41 = vsel %vm1729_vm1, %v1731_v63, %v1727_v34  ;;  %v1767_v35 = vsel %vm1766_vm4, %v2169_v43, %v1763_v53 }
 0x2e9   : > { %2174 = vrcp.f32 %v1738_v27  ;;  %v1795_v29 = vmul.f32 %v1794_v44, %v1732_v41  ;;  %v1772_v59 = vsel %vm1769_vm5, %v1771_v37, %v1767_v35  ;;  %v1750_v46 = vand.u32 2147483648, %v1738_v27 }
 0x2ea   : > { %v1802_v45 = vsub.f32 1.0, %v1772_v59  ;;  %v1748_v55 = vand.u32 2147483647, %v1738_v27  ;;  %v1804_v21 = vmul.f32 %v1772_v59, %v3841_v51  ;;  %vm1744_vm7 = vweird.f32 %v1738_v27 }
 0x2eb   : > { %v1796_v33 = vadd.f32 %v2076_v10, %v1795_v29  ;;  %v1751_v5 = vor.u32 1.1754944e-38, %v1750_v46 }
 0x2ec   : > { %v2173_v31 = vpop.eup %2172  ;;  %vm1749_vm10 = vcmp.eq.f32.partialorder %v1748_v55, 8.507059e+37 }
 0x2ed   : > { %v1778_v36 = vadd.f32 1.0, %v2173_v31  ;;  %2176 = vtanh.f32 %v1796_v33 }
 0x2ef   : > { %v2175_v32 = vpop.eup %2174  ;;  %2178 = vrcp.f32 %v1778_v36  ;;  %v1790_v2 = vand.u32 2147483648, %v1778_v36  ;;  %v1788_v38 = vand.u32 2147483647, %v1778_v36  ;;  %vm1784_vm12 = vweird.f32 %v1778_v36 }
 0x2f0   : > { %v1740_v39 = vmul.f32 %v2175_v32, %v1738_v27  ;;  %vm1745_vm6 = vweird.f32 %v2175_v32 }
 0x2f1   : > { %vm1746_vm9 = vmor %vm1744_vm7, %vm1745_vm6  ;;  %v1791_v26 = vor.u32 1.1754944e-38, %v1790_v2  ;;  %vm1789_vm14 = vcmp.eq.f32.partialorder %v1788_v38, 8.507059e+37 }
 0x2f2   : > { %v1741_v42 = vsub.f32 1.0, %v1740_v39 }
 0x2f3   : > { %v2177_v50 = vpop.eup %2176 }
 0x2f4   : > { %v1742_v49 = vmul.f32 %v2175_v32, %v1741_v42  ;;  %v1803_v9 = vmul.f32 %v2177_v50, %v1802_v45 }
 0x2f5   : > { %v2179_v14 = vpop.eup %2178 }
 0x2f6   : > { %v1780_v4 = vmul.f32 %v2179_v14, %v1778_v36  ;;  %v1743_v61 = vadd.f32 %v2175_v32, %v1742_v49  ;;  %v1805_v62 = vadd.f32 %v1804_v21, %v1803_v9  ;;  %vm1785_vm11 = vweird.f32 %v2179_v14 }
 0x2f7   : > { %vm1786_vm13 = vmor %vm1784_vm12, %vm1785_vm11 }
 0x2f8   : > { %v1781_v17 = vsub.f32 1.0, %v1780_v4  ;;  %v1747_v30 = vsel %vm1746_vm9, %v2175_v32, %v1743_v61  ;;  %v3874_v0 = vsel %vm1818_vm8, %v1805_v62, %v3841_v51  ;;  %v1826_v28 = vsel %vm1818_vm8, %v1805_v62, 0.0 }
 0x2f9   : > { %v1752_v1 = vsel %vm1749_vm10, %v1751_v5, %v1747_v30  ;;  %2081 = vst [vmem:[%s2281_s29 + $0x18] sm:$0xff] %v1826_v28 }
 0x2fa   : > { %v1782_v60 = vmul.f32 %v2179_v14, %v1781_v17  ;;  %v1799_v18 = vmul.f32 %v1798_v13, %v1752_v1  ;;  %1831 = vst [vmem:[#allocation2] sm:$0xff] %v3874_v0 }
 0x2fc   : > { %v1783_v11 = vadd.f32 %v2179_v14, %v1782_v60  ;;  %v1800_v22 = vadd.f32 %v1799_v18, %v1497_v56 }
 0x2fe   : > { %v1787_v43 = vsel %vm1786_vm13, %v2179_v14, %v1783_v11  ;;  %2180 = vtanh.f32 %v1800_v22 }
 0x2ff   : > { %v1792_v51 = vsel %vm1789_vm14, %v1791_v26, %v1787_v43 }
 0x300   : > { %v1806_v16 = vsub.f32 1.0, %v1792_v51  ;;  %v1808_v47 = vmul.f32 %v1792_v51, %v3859_v3 }
 0x304   : > { %v2181_v7 = vpop.eup %2180 }
 0x305   : > { %v1807_v23 = vmul.f32 %v2181_v7, %v1806_v16 }
 0x307   : > { %v1809_v24 = vadd.f32 %v1808_v47, %v1807_v23  ;;  %1836 = sbr.rel (%p2082_p6) target bundleno = 950 (0x3b6), region = 64 }
 0x309   : > { %v3881_v58 = vsel %vm1824_vm15, %v1809_v24, %v3859_v3  ;;  %v1829_v40 = vsel %vm1824_vm15, %v1809_v24, 0.0 }
 0x30a   : > { %1830 = vst [vmem:[%s2296_s22] sm:$0xff] %v1829_v40 }
 0x30b   : > { %1832 = vst [vmem:[#allocation3] sm:$0xff] %v3881_v58 }
 0x30c   : > { %v1852_v52 = vld [vmem:[%s4000_s7 + $0x78] sm:$0xff]  ;;  %v1851_v19 = vld [vmem:[%s4000_s7 + $0x70] sm:$0xff]  ;;  %v1850_v12 = vld [vmem:[%s4000_s7 + $0x68] sm:$0xff] }
 0x30d   : > { %v1868_v3 = vld [vmem:[%s4000_s7 + $0xf8] sm:$0xff]  ;;  %1873 = vmatpush.msra.mxu0 %v1852_v52  ;;  %v1867_v20 = vld [vmem:[%s4000_s7 + $0xf0] sm:$0xff]  ;;  %v1866_v8 = vld [vmem:[%s4000_s7 + $0xe8] sm:$0xff] }
 0x30e   : > { %1893 = vmatpush.msra.mxu1 %v1868_v3  ;;  %v1849_v25 = vld [vmem:[%s4000_s7 + $0x60] sm:$0xff]  ;;  %v1848_v27 = vld [vmem:[%s4000_s7 + $0x58] sm:$0xff]  ;;  %v1847_v34 = vld [vmem:[%s4000_s7 + $0x50] sm:$0xff] }
 0x30f   : > { %1874 = vmatpush.msra.mxu0 %v1851_v19  ;;  %v1865_v63 = vld [vmem:[%s4000_s7 + $0xe0] sm:$0xff]  ;;  %v1864_v44 = vld [vmem:[%s4000_s7 + $0xd8] sm:$0xff]  ;;  %v1863_v10 = vld [vmem:[%s4000_s7 + $0xd0] sm:$0xff] }
 0x310   : > { %1894 = vmatpush.msra.mxu1 %v1867_v20  ;;  %v1846_v41 = vld [vmem:[%s4000_s7 + $0x48] sm:$0xff]  ;;  %v1845_v29 = vld [vmem:[%s4000_s7 + $0x40] sm:$0xff]  ;;  %v1844_v54 = vld [vmem:[%s4000_s7 + $0x38] sm:$0xff] }
 0x311   : > { %1875 = vmatpush.msra.mxu0 %v1850_v12  ;;  %v1862_v53 = vld [vmem:[%s4000_s7 + $0xc8] sm:$0xff]  ;;  %v1861_v57 = vld [vmem:[%s4000_s7 + $0xc0] sm:$0xff]  ;;  %v1860_v31 = vld [vmem:[%s4000_s7 + $0xb8] sm:$0xff] }
 0x312   : > { %1895 = vmatpush.msra.mxu1 %v1866_v8  ;;  %v1843_v33 = vld [vmem:[%s4000_s7 + $0x30] sm:$0xff]  ;;  %v1842_v36 = vld [vmem:[%s4000_s7 + $0x28] sm:$0xff]  ;;  %v1841_v32 = vld [vmem:[%s4000_s7 + $0x20] sm:$0xff] }
 0x313   : > { %1876 = vmatpush.msra.mxu0 %v1849_v25  ;;  %v1859_v35 = vld [vmem:[%s4000_s7 + $0xb0] sm:$0xff]  ;;  %v1858_v37 = vld [vmem:[%s4000_s7 + $0xa8] sm:$0xff]  ;;  %v1857_v59 = vld [vmem:[%s4000_s7 + $0xa0] sm:$0xff] }
 0x314   : > { %1896 = vmatpush.msra.mxu1 %v1865_v63  ;;  %v1840_v39 = vld [vmem:[%s4000_s7 + $0x18] sm:$0xff]  ;;  %v1839_v45 = vld [vmem:[%s4000_s7 + $0x10] sm:$0xff]  ;;  %v1838_v50 = vld [vmem:[%s4000_s7 + $0x8] sm:$0xff] }
 0x315   : > { %1877 = vmatpush.msra.mxu0 %v1848_v27  ;;  %v1856_v42 = vld [vmem:[%s4000_s7 + $0x98] sm:$0xff]  ;;  %v1855_v46 = vld [vmem:[%s4000_s7 + $0x90] sm:$0xff]  ;;  %v1854_v48 = vld [vmem:[%s4000_s7 + $0x88] sm:$0xff] }
 0x316   : > { %1897 = vmatpush.msra.mxu1 %v1864_v44  ;;  %v1837_v49 = vld [vmem:[%s4000_s7] sm:$0xff] }
 0x317   : > { %1878 = vmatpush.msra.mxu0 %v1847_v34  ;;  %v1853_v55 = vld [vmem:[%s4000_s7 + $0x80] sm:$0xff] }
 0x318   : > { %1898 = vmatpush.msra.mxu1 %v1863_v10  ;;  %v2185_v14 = vld [vmem:[%s4001_s8] ss:$0 sm:$0xff] }
 0x319   : > { %1879 = vmatpush.msra.mxu0 %v1846_v41 }
 0x31a   : > { %1899 = vmatpush.msra.mxu1 %v1862_v53 }
 0x31b   : > { %1880 = vmatpush.msra.mxu0 %v1845_v29 }
 0x31c   : > { %1900 = vmatpush.msra.mxu1 %v1861_v57 }
 0x31d   : > { %1881 = vmatpush.msra.mxu0 %v1844_v54 }
 0x31e   : > { %1901 = vmatpush.msra.mxu1 %v1860_v31 }
 0x31f   : > { %1882 = vmatpush.msra.mxu0 %v1843_v33 }
 0x320   : > { %1902 = vmatpush.msra.mxu1 %v1859_v35 }
 0x321   : > { %1883 = vmatpush.msra.mxu0 %v1842_v36 }
 0x322   : > { %1903 = vmatpush.msra.mxu1 %v1858_v37 }
 0x323   : > { %1884 = vmatpush.msra.mxu0 %v1841_v32 }
 0x324   : > { %1904 = vmatpush.msra.mxu1 %v1857_v59 }
 0x325   : > { %1885 = vmatpush.msra.mxu0 %v1840_v39 }
 0x326   : > { %1905 = vmatpush.msra.mxu1 %v1856_v42 }
 0x327   : > { %1886 = vmatpush.msra.mxu0 %v1839_v45 }
 0x328   : > { %1906 = vmatpush.msra.mxu1 %v1855_v46 }
 0x329   : > { %1887 = vmatpush.msra.mxu0 %v1838_v50 }
 0x32a   : > { %1907 = vmatpush.msra.mxu1 %v1854_v48 }
 0x32b   : > { %1888 = vmatpush.msra.mxu0 %v1837_v49 }
 0x32c   : > { %1908 = vmatpush.msra.mxu1 %v1853_v55  ;;  %1889 = vmatmul.f32.vlgmr.msra.gmra.mxu0 %v3874_v0 }
 0x32d   : > { %1909 = vmatmul.f32.vlgmr.msra.gmra.mxu1 %v3881_v58 }
 0x3a9   : > { %v1890_v9 = vpop.f32.mrf.mxu0 }
 0x3aa   : > { %v1910_v21 = vpop.f32.mrf.mxu1  ;;  %v1891_v15 = vadd.f32 %v2185_v14, %v1890_v9 }
 0x3ac   : > { %v1911_v4 = vadd.f32 %v1910_v21, %v1891_v15 }
 0x3ae   : > { %2186 = vtanh.f32 %v1911_v4 }
 0x3b4   : > { %v2187_v61 = vpop.eup %2186 }
 0x3b5   : > { %1914 = vst [vmem:[%s4221_s18] sm:$0xff] %v2187_v61 }
 0x3b6 PF: > { %s4222_s25 = sld [smem:[#allocation4_spill]] }
 0x3bc   : > { %s22_s17 = sadd.s32 1, %s4222_s25  }
 0x3bd   : > { %p19_p7 = scmp.ge.s32.totalorder %s22_s17, 4  }
 0x3bf   :  { %21 = sbr.rel (!%p19_p7) target bundleno = 2 (0x2), region = 129 }

</bundles_post_ra>
